<compile_context>
chip_gen: v7x
topology: tpu7x:2x2x1
jax: 0.10.0
libtpu: 0.0.40
codegen_flags: <defaults>
</compile_context>

<pallas_src>
import functools

import jax
import jax.numpy as jnp
from jax.experimental import pallas as pl
from jax.experimental.pallas import tpu as pltpu


def _round_up(x, m):
    return ((x + m - 1) // m) * m


def _row_tile(rows, cap=2048):
    """Largest multiple-of-8 divisor of `rows` that is <= cap (fallback: rows)."""
    best = None
    for t in range(8, min(rows, cap) + 1, 8):
        if rows % t == 0:
            best = t
    return best if best is not None else rows


def make_conv3d_kernel(dil, H, W, Cin_pad, Cpad):
    """Conv3d kernel. Grid = (N, D_out); one output depth plane per step.

    Inputs per grid step:
      x0/x1/x2_ref : (1, 1, Hp, Wp, Cin_pad)  padded input planes d, d+dil, d+2*dil
      w_ref        : (27*Cin_pad, Cpad)       weights, row = tap*Cin_pad + ci
      b_ref        : (1, Cpad)                conv bias (zero-padded)
    Outputs per grid step:
      conv_ref     : (1, H*W, Cpad)           conv(x)+bias rows for plane d
      stats_ref    : (1, 1, 8, Cpad)          row 0 = per-channel sum,
                                              row 1 = per-channel sum of squares
    """
    HW = H * W

    def kernel(x0_ref, x1_ref, x2_ref, w_ref, b_ref, conv_ref, stats_ref):
        planes = (x0_ref, x1_ref, x2_ref)
        acc = jnp.zeros((HW, Cpad), jnp.float32)
        for kd in range(3):
            for kh in range(3):
                for kw in range(3):
                    # static H/W window of the (already VMEM-resident) plane
                    win = planes[kd][0, 0,
                                     kh * dil:kh * dil + H,
                                     kw * dil:kw * dil + W, :]       # (H, W, Cin_pad)
                    x2d = win.reshape(HW, Cin_pad)                    # (HW, Cin_pad)
                    tap = (kd * 3 + kh) * 3 + kw
                    w_tap = w_ref[tap * Cin_pad:(tap + 1) * Cin_pad, :]  # (Cin_pad, Cpad)
                    acc = acc + jnp.dot(x2d, w_tap,
                                        preferred_element_type=jnp.float32)
        out = acc + b_ref[...]                                        # (HW, Cpad)
        conv_ref[0] = out

        # per-(n, d) partial BN statistics (no cross-step accumulator -> grid
        # axes stay fully parallel).
        s = jnp.sum(out, axis=0, keepdims=True)          # (1, Cpad)
        ss = jnp.sum(out * out, axis=0, keepdims=True)   # (1, Cpad)
        rows = jax.lax.broadcasted_iota(jnp.int32, (8, Cpad), 0)
        stats_ref[0, 0] = jnp.where(rows == 0, s, jnp.where(rows == 1, ss, 0.0))

    return kernel


def bn_lrelu_kernel(y_ref, scale_ref, shift_ref, o_ref):
    """Per-channel affine BatchNorm + LeakyReLU(0.01) on lane-dense row tiles."""
    z = y_ref[...] * scale_ref[...] + shift_ref[...]
    o_ref[...] = jnp.where(z >= 0, z, 0.01 * z)


def cbr_conv3d_forward(x_ncdhw, weight, bias, gamma, beta, dirate=1, eps=1e-5):
    """Forward of CBRConv_3d. x_ncdhw: (N, Cin, D, H, W) -> (N, Cout, D, H, W)."""
    N, Cin, D, H, W = x_ncdhw.shape
    Cout = weight.shape[0]
    p = dirate
    Cin_pad = _round_up(Cin, 8)
    Cpad = _round_up(Cout, 128)
    HW = H * W
    R = D * HW

    # NCDHW -> NDHWC (channels on lanes); zero-pad D/H/W by dirate and Cin to Cin_pad.
    x = jnp.transpose(x_ncdhw, (0, 2, 3, 4, 1)).astype(jnp.float32)
    xp = jnp.pad(x, ((0, 0), (p, p), (p, p), (p, p), (0, Cin_pad - Cin)))
    Dp, Hp, Wp = D + 2 * p, H + 2 * p, W + 2 * p

    # (Cout, Cin, 3,3,3) -> (27*Cin_pad, Cpad); row = ((kd*3+kh)*3+kw)*Cin_pad + ci.
    w_t = jnp.transpose(weight, (2, 3, 4, 1, 0)).reshape(27, Cin, Cout).astype(jnp.float32)
    w_t = jnp.pad(w_t, ((0, 0), (0, Cin_pad - Cin), (0, Cpad - Cout)))
    w2 = w_t.reshape(27 * Cin_pad, Cpad)
    b2 = jnp.pad(bias.astype(jnp.float32).reshape(1, Cout), ((0, 0), (0, Cpad - Cout)))

    conv_flat, stats = pl.pallas_call(
        make_conv3d_kernel(p, H, W, Cin_pad, Cpad),
        grid=(N, D),
        in_specs=[
            pl.BlockSpec((1, 1, Hp, Wp, Cin_pad), lambda n, d: (n, d, 0, 0, 0)),
            pl.BlockSpec((1, 1, Hp, Wp, Cin_pad), lambda n, d: (n, d + p, 0, 0, 0)),
            pl.BlockSpec((1, 1, Hp, Wp, Cin_pad), lambda n, d: (n, d + 2 * p, 0, 0, 0)),
            pl.BlockSpec((27 * Cin_pad, Cpad), lambda n, d: (0, 0)),
            pl.BlockSpec((1, Cpad), lambda n, d: (0, 0)),
        ],
        out_specs=[
            pl.BlockSpec((1, HW, Cpad), lambda n, d: (n, d, 0)),
            pl.BlockSpec((1, 1, 8, Cpad), lambda n, d: (n, d, 0, 0)),
        ],
        out_shape=[
            jax.ShapeDtypeStruct((N, R, Cpad), jnp.float32),
            jax.ShapeDtypeStruct((N, D, 8, Cpad), jnp.float32),
        ],
        compiler_params=pltpu.CompilerParams(
            dimension_semantics=("parallel", "parallel")),
    )(xp, xp, xp, w2, b2)

    # BatchNorm3d (training mode): biased variance over (N, D, H, W) per channel.
    count = float(N * R)
    ch_sum = jnp.sum(stats[:, :, 0, :Cout], axis=(0, 1))
    ch_sq = jnp.sum(stats[:, :, 1, :Cout], axis=(0, 1))
    mean = ch_sum / count
    var = ch_sq / count - mean * mean
    scale = gamma.astype(jnp.float32) / jnp.sqrt(var + eps)
    shift = beta.astype(jnp.float32) - mean * scale
    scale_p = jnp.pad(scale.reshape(1, Cout), ((0, 0), (0, Cpad - Cout)))
    shift_p = jnp.pad(shift.reshape(1, Cout), ((0, 0), (0, Cpad - Cout)))

    TR = _row_tile(R)
    out_flat = pl.pallas_call(
        bn_lrelu_kernel,
        grid=(N, R // TR),
        in_specs=[
            pl.BlockSpec((1, TR, Cpad), lambda n, r: (n, r, 0)),
            pl.BlockSpec((1, Cpad), lambda n, r: (0, 0)),
            pl.BlockSpec((1, Cpad), lambda n, r: (0, 0)),
        ],
        out_specs=pl.BlockSpec((1, TR, Cpad), lambda n, r: (n, r, 0)),
        out_shape=jax.ShapeDtypeStruct((N, R, Cpad), jnp.float32),
        input_output_aliases={0: 0},   # write BN/LeakyReLU result over conv_out
        compiler_params=pltpu.CompilerParams(
            dimension_semantics=("parallel", "parallel")),
    )(conv_flat, scale_p, shift_p)

    out = out_flat.reshape(N, D, H, W, Cpad)[..., :Cout]
    return jnp.transpose(out, (0, 4, 1, 2, 3))   # back to NCDHW


def reference_forward(x_ncdhw, weight, bias, gamma, beta, dirate=1, eps=1e-5):
    """Pure-JAX reference of the same forward (for correctness check)."""
    y = jax.lax.conv_general_dilated(
        x_ncdhw, weight,
        window_strides=(1, 1, 1),
        padding=[(dirate, dirate)] * 3,
        rhs_dilation=(dirate,) * 3,
        dimension_numbers=("NCDHW", "OIDHW", "NCDHW"),
        precision=jax.lax.Precision.HIGHEST)
    y = y + bias.reshape(1, -1, 1, 1, 1)
    mean = jnp.mean(y, axis=(0, 2, 3, 4), keepdims=True)
    var = jnp.var(y, axis=(0, 2, 3, 4), keepdims=True)
    z = (y - mean) / jnp.sqrt(var + eps)
    z = z * gamma.reshape(1, -1, 1, 1, 1) + beta.reshape(1, -1, 1, 1, 1)
    return jnp.where(z >= 0, z, 0.01 * z)


if __name__ == "__main__":
    # small shapes consistent with the module: N=2, Cin=4, Cout=4, D=H=W=8, dirate=1
    N, Cin, Cout, D, H, W = 2, 4, 4, 8, 8, 8
    dirate = 1

    key = jax.random.PRNGKey(0)
    kx, kw, kb = jax.random.split(key, 3)
    x = jax.random.normal(kx, (N, Cin, D, H, W), dtype=jnp.float32)
    weight = 0.1 * jax.random.normal(kw, (Cout, Cin, 3, 3, 3), dtype=jnp.float32)
    bias = 0.1 * jax.random.normal(kb, (Cout,), dtype=jnp.float32)
    gamma = jnp.ones((Cout,), jnp.float32)   # BatchNorm3d default affine init
    beta = jnp.zeros((Cout,), jnp.float32)

    fwd = jax.jit(functools.partial(cbr_conv3d_forward, dirate=dirate))
    out = jax.block_until_ready(fwd(x, weight, bias, gamma, beta))

    ref = jax.block_until_ready(
        reference_forward(x, weight, bias, gamma, beta, dirate=dirate))

    assert out.shape == (N, Cout, D, H, W)
    max_err = float(jnp.max(jnp.abs(out - ref)))
    assert jnp.allclose(out, ref, atol=1e-2, rtol=1e-2), max_err
    print("KERNEL_OK")
</pallas_src>

<mosaic_0001>
module attributes {stable_mosaic.version = 11 : i64} {
  func.func @kernel(%arg0: i32, %arg1: i32, %arg2: memref<1x1x10x10x8xf32, #tpu.memory_space<vmem>>, %arg3: memref<1x1x10x10x8xf32, #tpu.memory_space<vmem>>, %arg4: memref<1x1x10x10x8xf32, #tpu.memory_space<vmem>>, %arg5: memref<216x128xf32, #tpu.memory_space<vmem>>, %arg6: memref<1x128xf32, #tpu.memory_space<vmem>>, %arg7: memref<1x64x128xf32, #tpu.memory_space<vmem>>, %arg8: memref<1x1x8x128xf32, #tpu.memory_space<vmem>>) attributes {dimension_semantics = [#tpu.dimension_semantics<parallel>, #tpu.dimension_semantics<parallel>], iteration_bounds = array<i64: 2, 8>, scalar_prefetch = 0 : i64, scratch_operands = 0 : i64, tpu.core_type = #tpu.core_type<tc>, window_params = [{transform_indices = @transform_0, window_bounds = array<i64: 1, 1, 10, 10, 8>}, {transform_indices = @transform_1, window_bounds = array<i64: 1, 1, 10, 10, 8>}, {transform_indices = @transform_2, window_bounds = array<i64: 1, 1, 10, 10, 8>}, {pipeline_mode = #tpu.pipeline_mode<synchronous>, transform_indices = @transform_3, window_bounds = array<i64: 216, 128>}, {pipeline_mode = #tpu.pipeline_mode<synchronous>, transform_indices = @transform_4, window_bounds = array<i64: 1, 128>}, {transform_indices = @transform_5, window_bounds = array<i64: 1, 64, 128>}, {transform_indices = @transform_6, window_bounds = array<i64: 1, 1, 8, 128>}]} {
    %cst = arith.constant 0.000000e+00 : f32
    %0 = vector.broadcast %cst : f32 to vector<64x128xf32>
    %c0 = arith.constant 0 : index
    %c0_0 = arith.constant 0 : index
    %c0_1 = arith.constant 0 : index
    %c0_2 = arith.constant 0 : index
    %c0_3 = arith.constant 0 : index
    %1 = vector.load %arg2[%c0, %c0_0, %c0_1, %c0_2, %c0_3] : memref<1x1x10x10x8xf32, #tpu.memory_space<vmem>>, vector<1x1x8x8x8xf32>
    %2 = vector.shape_cast %1 : vector<1x1x8x8x8xf32> to vector<8x8x8xf32>
    %3 = vector.shape_cast %2 : vector<8x8x8xf32> to vector<64x8xf32>
    %c0_4 = arith.constant 0 : index
    %c0_5 = arith.constant 0 : index
    %4 = vector.load %arg5[%c0_4, %c0_5] : memref<216x128xf32, #tpu.memory_space<vmem>>, vector<8x128xf32>
    %cst_6 = arith.constant dense<0.000000e+00> : vector<64x128xf32>
    %5 = tpu.matmul %3, %4, %cst_6 {dimension_numbers = #tpu.dot_dimension_numbers<[1], [0], [0], [1], [0, 0, 1, 1], [], []>} : vector<64x8xf32>, vector<8x128xf32>, vector<64x128xf32> -> vector<64x128xf32>
    %6 = arith.addf %0, %5 : vector<64x128xf32>
    %c0_7 = arith.constant 0 : index
    %c0_8 = arith.constant 0 : index
    %c0_9 = arith.constant 0 : index
    %c1 = arith.constant 1 : index
    %c0_10 = arith.constant 0 : index
    %7 = vector.load %arg2[%c0_7, %c0_8, %c0_9, %c1, %c0_10] : memref<1x1x10x10x8xf32, #tpu.memory_space<vmem>>, vector<1x1x8x8x8xf32>
    %8 = vector.shape_cast %7 : vector<1x1x8x8x8xf32> to vector<8x8x8xf32>
    %9 = vector.shape_cast %8 : vector<8x8x8xf32> to vector<64x8xf32>
    %c8 = arith.constant 8 : index
    %c0_11 = arith.constant 0 : index
    %10 = vector.load %arg5[%c8, %c0_11] : memref<216x128xf32, #tpu.memory_space<vmem>>, vector<8x128xf32>
    %cst_12 = arith.constant dense<0.000000e+00> : vector<64x128xf32>
    %11 = tpu.matmul %9, %10, %cst_12 {dimension_numbers = #tpu.dot_dimension_numbers<[1], [0], [0], [1], [0, 0, 1, 1], [], []>} : vector<64x8xf32>, vector<8x128xf32>, vector<64x128xf32> -> vector<64x128xf32>
    %12 = arith.addf %6, %11 : vector<64x128xf32>
    %c0_13 = arith.constant 0 : index
    %c0_14 = arith.constant 0 : index
    %c0_15 = arith.constant 0 : index
    %c2 = arith.constant 2 : index
    %c0_16 = arith.constant 0 : index
    %13 = vector.load %arg2[%c0_13, %c0_14, %c0_15, %c2, %c0_16] : memref<1x1x10x10x8xf32, #tpu.memory_space<vmem>>, vector<1x1x8x8x8xf32>
    %14 = vector.shape_cast %13 : vector<1x1x8x8x8xf32> to vector<8x8x8xf32>
    %15 = vector.shape_cast %14 : vector<8x8x8xf32> to vector<64x8xf32>
    %c16 = arith.constant 16 : index
    %c0_17 = arith.constant 0 : index
    %16 = vector.load %arg5[%c16, %c0_17] : memref<216x128xf32, #tpu.memory_space<vmem>>, vector<8x128xf32>
    %cst_18 = arith.constant dense<0.000000e+00> : vector<64x128xf32>
    %17 = tpu.matmul %15, %16, %cst_18 {dimension_numbers = #tpu.dot_dimension_numbers<[1], [0], [0], [1], [0, 0, 1, 1], [], []>} : vector<64x8xf32>, vector<8x128xf32>, vector<64x128xf32> -> vector<64x128xf32>
    %18 = arith.addf %12, %17 : vector<64x128xf32>
    %c0_19 = arith.constant 0 : index
    %c0_20 = arith.constant 0 : index
    %c1_21 = arith.constant 1 : index
    %c0_22 = arith.constant 0 : index
    %c0_23 = arith.constant 0 : index
    %19 = vector.load %arg2[%c0_19, %c0_20, %c1_21, %c0_22, %c0_23] : memref<1x1x10x10x8xf32, #tpu.memory_space<vmem>>, vector<1x1x8x8x8xf32>
    %20 = vector.shape_cast %19 : vector<1x1x8x8x8xf32> to vector<8x8x8xf32>
    %21 = vector.shape_cast %20 : vector<8x8x8xf32> to vector<64x8xf32>
    %c24 = arith.constant 24 : index
    %c0_24 = arith.constant 0 : index
    %22 = vector.load %arg5[%c24, %c0_24] : memref<216x128xf32, #tpu.memory_space<vmem>>, vector<8x128xf32>
    %cst_25 = arith.constant dense<0.000000e+00> : vector<64x128xf32>
    %23 = tpu.matmul %21, %22, %cst_25 {dimension_numbers = #tpu.dot_dimension_numbers<[1], [0], [0], [1], [0, 0, 1, 1], [], []>} : vector<64x8xf32>, vector<8x128xf32>, vector<64x128xf32> -> vector<64x128xf32>
    %24 = arith.addf %18, %23 : vector<64x128xf32>
    %c0_26 = arith.constant 0 : index
    %c0_27 = arith.constant 0 : index
    %c1_28 = arith.constant 1 : index
    %c1_29 = arith.constant 1 : index
    %c0_30 = arith.constant 0 : index
    %25 = vector.load %arg2[%c0_26, %c0_27, %c1_28, %c1_29, %c0_30] : memref<1x1x10x10x8xf32, #tpu.memory_space<vmem>>, vector<1x1x8x8x8xf32>
    %26 = vector.shape_cast %25 : vector<1x1x8x8x8xf32> to vector<8x8x8xf32>
    %27 = vector.shape_cast %26 : vector<8x8x8xf32> to vector<64x8xf32>
    %c32 = arith.constant 32 : index
    %c0_31 = arith.constant 0 : index
    %28 = vector.load %arg5[%c32, %c0_31] : memref<216x128xf32, #tpu.memory_space<vmem>>, vector<8x128xf32>
    %cst_32 = arith.constant dense<0.000000e+00> : vector<64x128xf32>
    %29 = tpu.matmul %27, %28, %cst_32 {dimension_numbers = #tpu.dot_dimension_numbers<[1], [0], [0], [1], [0, 0, 1, 1], [], []>} : vector<64x8xf32>, vector<8x128xf32>, vector<64x128xf32> -> vector<64x128xf32>
    %30 = arith.addf %24, %29 : vector<64x128xf32>
    %c0_33 = arith.constant 0 : index
    %c0_34 = arith.constant 0 : index
    %c1_35 = arith.constant 1 : index
    %c2_36 = arith.constant 2 : index
    %c0_37 = arith.constant 0 : index
    %31 = vector.load %arg2[%c0_33, %c0_34, %c1_35, %c2_36, %c0_37] : memref<1x1x10x10x8xf32, #tpu.memory_space<vmem>>, vector<1x1x8x8x8xf32>
    %32 = vector.shape_cast %31 : vector<1x1x8x8x8xf32> to vector<8x8x8xf32>
    %33 = vector.shape_cast %32 : vector<8x8x8xf32> to vector<64x8xf32>
    %c40 = arith.constant 40 : index
    %c0_38 = arith.constant 0 : index
    %34 = vector.load %arg5[%c40, %c0_38] : memref<216x128xf32, #tpu.memory_space<vmem>>, vector<8x128xf32>
    %cst_39 = arith.constant dense<0.000000e+00> : vector<64x128xf32>
    %35 = tpu.matmul %33, %34, %cst_39 {dimension_numbers = #tpu.dot_dimension_numbers<[1], [0], [0], [1], [0, 0, 1, 1], [], []>} : vector<64x8xf32>, vector<8x128xf32>, vector<64x128xf32> -> vector<64x128xf32>
    %36 = arith.addf %30, %35 : vector<64x128xf32>
    %c0_40 = arith.constant 0 : index
    %c0_41 = arith.constant 0 : index
    %c2_42 = arith.constant 2 : index
    %c0_43 = arith.constant 0 : index
    %c0_44 = arith.constant 0 : index
    %37 = vector.load %arg2[%c0_40, %c0_41, %c2_42, %c0_43, %c0_44] : memref<1x1x10x10x8xf32, #tpu.memory_space<vmem>>, vector<1x1x8x8x8xf32>
    %38 = vector.shape_cast %37 : vector<1x1x8x8x8xf32> to vector<8x8x8xf32>
    %39 = vector.shape_cast %38 : vector<8x8x8xf32> to vector<64x8xf32>
    %c48 = arith.constant 48 : index
    %c0_45 = arith.constant 0 : index
    %40 = vector.load %arg5[%c48, %c0_45] : memref<216x128xf32, #tpu.memory_space<vmem>>, vector<8x128xf32>
    %cst_46 = arith.constant dense<0.000000e+00> : vector<64x128xf32>
    %41 = tpu.matmul %39, %40, %cst_46 {dimension_numbers = #tpu.dot_dimension_numbers<[1], [0], [0], [1], [0, 0, 1, 1], [], []>} : vector<64x8xf32>, vector<8x128xf32>, vector<64x128xf32> -> vector<64x128xf32>
    %42 = arith.addf %36, %41 : vector<64x128xf32>
    %c0_47 = arith.constant 0 : index
    %c0_48 = arith.constant 0 : index
    %c2_49 = arith.constant 2 : index
    %c1_50 = arith.constant 1 : index
    %c0_51 = arith.constant 0 : index
    %43 = vector.load %arg2[%c0_47, %c0_48, %c2_49, %c1_50, %c0_51] : memref<1x1x10x10x8xf32, #tpu.memory_space<vmem>>, vector<1x1x8x8x8xf32>
    %44 = vector.shape_cast %43 : vector<1x1x8x8x8xf32> to vector<8x8x8xf32>
    %45 = vector.shape_cast %44 : vector<8x8x8xf32> to vector<64x8xf32>
    %c56 = arith.constant 56 : index
    %c0_52 = arith.constant 0 : index
    %46 = vector.load %arg5[%c56, %c0_52] : memref<216x128xf32, #tpu.memory_space<vmem>>, vector<8x128xf32>
    %cst_53 = arith.constant dense<0.000000e+00> : vector<64x128xf32>
    %47 = tpu.matmul %45, %46, %cst_53 {dimension_numbers = #tpu.dot_dimension_numbers<[1], [0], [0], [1], [0, 0, 1, 1], [], []>} : vector<64x8xf32>, vector<8x128xf32>, vector<64x128xf32> -> vector<64x128xf32>
    %48 = arith.addf %42, %47 : vector<64x128xf32>
    %c0_54 = arith.constant 0 : index
    %c0_55 = arith.constant 0 : index
    %c2_56 = arith.constant 2 : index
    %c2_57 = arith.constant 2 : index
    %c0_58 = arith.constant 0 : index
    %49 = vector.load %arg2[%c0_54, %c0_55, %c2_56, %c2_57, %c0_58] : memref<1x1x10x10x8xf32, #tpu.memory_space<vmem>>, vector<1x1x8x8x8xf32>
    %50 = vector.shape_cast %49 : vector<1x1x8x8x8xf32> to vector<8x8x8xf32>
    %51 = vector.shape_cast %50 : vector<8x8x8xf32> to vector<64x8xf32>
    %c64 = arith.constant 64 : index
    %c0_59 = arith.constant 0 : index
    %52 = vector.load %arg5[%c64, %c0_59] : memref<216x128xf32, #tpu.memory_space<vmem>>, vector<8x128xf32>
    %cst_60 = arith.constant dense<0.000000e+00> : vector<64x128xf32>
    %53 = tpu.matmul %51, %52, %cst_60 {dimension_numbers = #tpu.dot_dimension_numbers<[1], [0], [0], [1], [0, 0, 1, 1], [], []>} : vector<64x8xf32>, vector<8x128xf32>, vector<64x128xf32> -> vector<64x128xf32>
    %54 = arith.addf %48, %53 : vector<64x128xf32>
    %c0_61 = arith.constant 0 : index
    %c0_62 = arith.constant 0 : index
    %c0_63 = arith.constant 0 : index
    %c0_64 = arith.constant 0 : index
    %c0_65 = arith.constant 0 : index
    %55 = vector.load %arg3[%c0_61, %c0_62, %c0_63, %c0_64, %c0_65] : memref<1x1x10x10x8xf32, #tpu.memory_space<vmem>>, vector<1x1x8x8x8xf32>
    %56 = vector.shape_cast %55 : vector<1x1x8x8x8xf32> to vector<8x8x8xf32>
    %57 = vector.shape_cast %56 : vector<8x8x8xf32> to vector<64x8xf32>
    %c72 = arith.constant 72 : index
    %c0_66 = arith.constant 0 : index
    %58 = vector.load %arg5[%c72, %c0_66] : memref<216x128xf32, #tpu.memory_space<vmem>>, vector<8x128xf32>
    %cst_67 = arith.constant dense<0.000000e+00> : vector<64x128xf32>
    %59 = tpu.matmul %57, %58, %cst_67 {dimension_numbers = #tpu.dot_dimension_numbers<[1], [0], [0], [1], [0, 0, 1, 1], [], []>} : vector<64x8xf32>, vector<8x128xf32>, vector<64x128xf32> -> vector<64x128xf32>
    %60 = arith.addf %54, %59 : vector<64x128xf32>
    %c0_68 = arith.constant 0 : index
    %c0_69 = arith.constant 0 : index
    %c0_70 = arith.constant 0 : index
    %c1_71 = arith.constant 1 : index
    %c0_72 = arith.constant 0 : index
    %61 = vector.load %arg3[%c0_68, %c0_69, %c0_70, %c1_71, %c0_72] : memref<1x1x10x10x8xf32, #tpu.memory_space<vmem>>, vector<1x1x8x8x8xf32>
    %62 = vector.shape_cast %61 : vector<1x1x8x8x8xf32> to vector<8x8x8xf32>
    %63 = vector.shape_cast %62 : vector<8x8x8xf32> to vector<64x8xf32>
    %c80 = arith.constant 80 : index
    %c0_73 = arith.constant 0 : index
    %64 = vector.load %arg5[%c80, %c0_73] : memref<216x128xf32, #tpu.memory_space<vmem>>, vector<8x128xf32>
    %cst_74 = arith.constant dense<0.000000e+00> : vector<64x128xf32>
    %65 = tpu.matmul %63, %64, %cst_74 {dimension_numbers = #tpu.dot_dimension_numbers<[1], [0], [0], [1], [0, 0, 1, 1], [], []>} : vector<64x8xf32>, vector<8x128xf32>, vector<64x128xf32> -> vector<64x128xf32>
    %66 = arith.addf %60, %65 : vector<64x128xf32>
    %c0_75 = arith.constant 0 : index
    %c0_76 = arith.constant 0 : index
    %c0_77 = arith.constant 0 : index
    %c2_78 = arith.constant 2 : index
    %c0_79 = arith.constant 0 : index
    %67 = vector.load %arg3[%c0_75, %c0_76, %c0_77, %c2_78, %c0_79] : memref<1x1x10x10x8xf32, #tpu.memory_space<vmem>>, vector<1x1x8x8x8xf32>
    %68 = vector.shape_cast %67 : vector<1x1x8x8x8xf32> to vector<8x8x8xf32>
    %69 = vector.shape_cast %68 : vector<8x8x8xf32> to vector<64x8xf32>
    %c88 = arith.constant 88 : index
    %c0_80 = arith.constant 0 : index
    %70 = vector.load %arg5[%c88, %c0_80] : memref<216x128xf32, #tpu.memory_space<vmem>>, vector<8x128xf32>
    %cst_81 = arith.constant dense<0.000000e+00> : vector<64x128xf32>
    %71 = tpu.matmul %69, %70, %cst_81 {dimension_numbers = #tpu.dot_dimension_numbers<[1], [0], [0], [1], [0, 0, 1, 1], [], []>} : vector<64x8xf32>, vector<8x128xf32>, vector<64x128xf32> -> vector<64x128xf32>
    %72 = arith.addf %66, %71 : vector<64x128xf32>
    %c0_82 = arith.constant 0 : index
    %c0_83 = arith.constant 0 : index
    %c1_84 = arith.constant 1 : index
    %c0_85 = arith.constant 0 : index
    %c0_86 = arith.constant 0 : index
    %73 = vector.load %arg3[%c0_82, %c0_83, %c1_84, %c0_85, %c0_86] : memref<1x1x10x10x8xf32, #tpu.memory_space<vmem>>, vector<1x1x8x8x8xf32>
    %74 = vector.shape_cast %73 : vector<1x1x8x8x8xf32> to vector<8x8x8xf32>
    %75 = vector.shape_cast %74 : vector<8x8x8xf32> to vector<64x8xf32>
    %c96 = arith.constant 96 : index
    %c0_87 = arith.constant 0 : index
    %76 = vector.load %arg5[%c96, %c0_87] : memref<216x128xf32, #tpu.memory_space<vmem>>, vector<8x128xf32>
    %cst_88 = arith.constant dense<0.000000e+00> : vector<64x128xf32>
    %77 = tpu.matmul %75, %76, %cst_88 {dimension_numbers = #tpu.dot_dimension_numbers<[1], [0], [0], [1], [0, 0, 1, 1], [], []>} : vector<64x8xf32>, vector<8x128xf32>, vector<64x128xf32> -> vector<64x128xf32>
    %78 = arith.addf %72, %77 : vector<64x128xf32>
    %c0_89 = arith.constant 0 : index
    %c0_90 = arith.constant 0 : index
    %c1_91 = arith.constant 1 : index
    %c1_92 = arith.constant 1 : index
    %c0_93 = arith.constant 0 : index
    %79 = vector.load %arg3[%c0_89, %c0_90, %c1_91, %c1_92, %c0_93] : memref<1x1x10x10x8xf32, #tpu.memory_space<vmem>>, vector<1x1x8x8x8xf32>
    %80 = vector.shape_cast %79 : vector<1x1x8x8x8xf32> to vector<8x8x8xf32>
    %81 = vector.shape_cast %80 : vector<8x8x8xf32> to vector<64x8xf32>
    %c104 = arith.constant 104 : index
    %c0_94 = arith.constant 0 : index
    %82 = vector.load %arg5[%c104, %c0_94] : memref<216x128xf32, #tpu.memory_space<vmem>>, vector<8x128xf32>
    %cst_95 = arith.constant dense<0.000000e+00> : vector<64x128xf32>
    %83 = tpu.matmul %81, %82, %cst_95 {dimension_numbers = #tpu.dot_dimension_numbers<[1], [0], [0], [1], [0, 0, 1, 1], [], []>} : vector<64x8xf32>, vector<8x128xf32>, vector<64x128xf32> -> vector<64x128xf32>
    %84 = arith.addf %78, %83 : vector<64x128xf32>
    %c0_96 = arith.constant 0 : index
    %c0_97 = arith.constant 0 : index
    %c1_98 = arith.constant 1 : index
    %c2_99 = arith.constant 2 : index
    %c0_100 = arith.constant 0 : index
    %85 = vector.load %arg3[%c0_96, %c0_97, %c1_98, %c2_99, %c0_100] : memref<1x1x10x10x8xf32, #tpu.memory_space<vmem>>, vector<1x1x8x8x8xf32>
    %86 = vector.shape_cast %85 : vector<1x1x8x8x8xf32> to vector<8x8x8xf32>
    %87 = vector.shape_cast %86 : vector<8x8x8xf32> to vector<64x8xf32>
    %c112 = arith.constant 112 : index
    %c0_101 = arith.constant 0 : index
    %88 = vector.load %arg5[%c112, %c0_101] : memref<216x128xf32, #tpu.memory_space<vmem>>, vector<8x128xf32>
    %cst_102 = arith.constant dense<0.000000e+00> : vector<64x128xf32>
    %89 = tpu.matmul %87, %88, %cst_102 {dimension_numbers = #tpu.dot_dimension_numbers<[1], [0], [0], [1], [0, 0, 1, 1], [], []>} : vector<64x8xf32>, vector<8x128xf32>, vector<64x128xf32> -> vector<64x128xf32>
    %90 = arith.addf %84, %89 : vector<64x128xf32>
    %c0_103 = arith.constant 0 : index
    %c0_104 = arith.constant 0 : index
    %c2_105 = arith.constant 2 : index
    %c0_106 = arith.constant 0 : index
    %c0_107 = arith.constant 0 : index
    %91 = vector.load %arg3[%c0_103, %c0_104, %c2_105, %c0_106, %c0_107] : memref<1x1x10x10x8xf32, #tpu.memory_space<vmem>>, vector<1x1x8x8x8xf32>
    %92 = vector.shape_cast %91 : vector<1x1x8x8x8xf32> to vector<8x8x8xf32>
    %93 = vector.shape_cast %92 : vector<8x8x8xf32> to vector<64x8xf32>
    %c120 = arith.constant 120 : index
    %c0_108 = arith.constant 0 : index
    %94 = vector.load %arg5[%c120, %c0_108] : memref<216x128xf32, #tpu.memory_space<vmem>>, vector<8x128xf32>
    %cst_109 = arith.constant dense<0.000000e+00> : vector<64x128xf32>
    %95 = tpu.matmul %93, %94, %cst_109 {dimension_numbers = #tpu.dot_dimension_numbers<[1], [0], [0], [1], [0, 0, 1, 1], [], []>} : vector<64x8xf32>, vector<8x128xf32>, vector<64x128xf32> -> vector<64x128xf32>
    %96 = arith.addf %90, %95 : vector<64x128xf32>
    %c0_110 = arith.constant 0 : index
    %c0_111 = arith.constant 0 : index
    %c2_112 = arith.constant 2 : index
    %c1_113 = arith.constant 1 : index
    %c0_114 = arith.constant 0 : index
    %97 = vector.load %arg3[%c0_110, %c0_111, %c2_112, %c1_113, %c0_114] : memref<1x1x10x10x8xf32, #tpu.memory_space<vmem>>, vector<1x1x8x8x8xf32>
    %98 = vector.shape_cast %97 : vector<1x1x8x8x8xf32> to vector<8x8x8xf32>
    %99 = vector.shape_cast %98 : vector<8x8x8xf32> to vector<64x8xf32>
    %c128 = arith.constant 128 : index
    %c0_115 = arith.constant 0 : index
    %100 = vector.load %arg5[%c128, %c0_115] : memref<216x128xf32, #tpu.memory_space<vmem>>, vector<8x128xf32>
    %cst_116 = arith.constant dense<0.000000e+00> : vector<64x128xf32>
    %101 = tpu.matmul %99, %100, %cst_116 {dimension_numbers = #tpu.dot_dimension_numbers<[1], [0], [0], [1], [0, 0, 1, 1], [], []>} : vector<64x8xf32>, vector<8x128xf32>, vector<64x128xf32> -> vector<64x128xf32>
    %102 = arith.addf %96, %101 : vector<64x128xf32>
    %c0_117 = arith.constant 0 : index
    %c0_118 = arith.constant 0 : index
    %c2_119 = arith.constant 2 : index
    %c2_120 = arith.constant 2 : index
    %c0_121 = arith.constant 0 : index
    %103 = vector.load %arg3[%c0_117, %c0_118, %c2_119, %c2_120, %c0_121] : memref<1x1x10x10x8xf32, #tpu.memory_space<vmem>>, vector<1x1x8x8x8xf32>
    %104 = vector.shape_cast %103 : vector<1x1x8x8x8xf32> to vector<8x8x8xf32>
    %105 = vector.shape_cast %104 : vector<8x8x8xf32> to vector<64x8xf32>
    %c136 = arith.constant 136 : index
    %c0_122 = arith.constant 0 : index
    %106 = vector.load %arg5[%c136, %c0_122] : memref<216x128xf32, #tpu.memory_space<vmem>>, vector<8x128xf32>
    %cst_123 = arith.constant dense<0.000000e+00> : vector<64x128xf32>
    %107 = tpu.matmul %105, %106, %cst_123 {dimension_numbers = #tpu.dot_dimension_numbers<[1], [0], [0], [1], [0, 0, 1, 1], [], []>} : vector<64x8xf32>, vector<8x128xf32>, vector<64x128xf32> -> vector<64x128xf32>
    %108 = arith.addf %102, %107 : vector<64x128xf32>
    %c0_124 = arith.constant 0 : index
    %c0_125 = arith.constant 0 : index
    %c0_126 = arith.constant 0 : index
    %c0_127 = arith.constant 0 : index
    %c0_128 = arith.constant 0 : index
    %109 = vector.load %arg4[%c0_124, %c0_125, %c0_126, %c0_127, %c0_128] : memref<1x1x10x10x8xf32, #tpu.memory_space<vmem>>, vector<1x1x8x8x8xf32>
    %110 = vector.shape_cast %109 : vector<1x1x8x8x8xf32> to vector<8x8x8xf32>
    %111 = vector.shape_cast %110 : vector<8x8x8xf32> to vector<64x8xf32>
    %c144 = arith.constant 144 : index
    %c0_129 = arith.constant 0 : index
    %112 = vector.load %arg5[%c144, %c0_129] : memref<216x128xf32, #tpu.memory_space<vmem>>, vector<8x128xf32>
    %cst_130 = arith.constant dense<0.000000e+00> : vector<64x128xf32>
    %113 = tpu.matmul %111, %112, %cst_130 {dimension_numbers = #tpu.dot_dimension_numbers<[1], [0], [0], [1], [0, 0, 1, 1], [], []>} : vector<64x8xf32>, vector<8x128xf32>, vector<64x128xf32> -> vector<64x128xf32>
    %114 = arith.addf %108, %113 : vector<64x128xf32>
    %c0_131 = arith.constant 0 : index
    %c0_132 = arith.constant 0 : index
    %c0_133 = arith.constant 0 : index
    %c1_134 = arith.constant 1 : index
    %c0_135 = arith.constant 0 : index
    %115 = vector.load %arg4[%c0_131, %c0_132, %c0_133, %c1_134, %c0_135] : memref<1x1x10x10x8xf32, #tpu.memory_space<vmem>>, vector<1x1x8x8x8xf32>
    %116 = vector.shape_cast %115 : vector<1x1x8x8x8xf32> to vector<8x8x8xf32>
    %117 = vector.shape_cast %116 : vector<8x8x8xf32> to vector<64x8xf32>
    %c152 = arith.constant 152 : index
    %c0_136 = arith.constant 0 : index
    %118 = vector.load %arg5[%c152, %c0_136] : memref<216x128xf32, #tpu.memory_space<vmem>>, vector<8x128xf32>
    %cst_137 = arith.constant dense<0.000000e+00> : vector<64x128xf32>
    %119 = tpu.matmul %117, %118, %cst_137 {dimension_numbers = #tpu.dot_dimension_numbers<[1], [0], [0], [1], [0, 0, 1, 1], [], []>} : vector<64x8xf32>, vector<8x128xf32>, vector<64x128xf32> -> vector<64x128xf32>
    %120 = arith.addf %114, %119 : vector<64x128xf32>
    %c0_138 = arith.constant 0 : index
    %c0_139 = arith.constant 0 : index
    %c0_140 = arith.constant 0 : index
    %c2_141 = arith.constant 2 : index
    %c0_142 = arith.constant 0 : index
    %121 = vector.load %arg4[%c0_138, %c0_139, %c0_140, %c2_141, %c0_142] : memref<1x1x10x10x8xf32, #tpu.memory_space<vmem>>, vector<1x1x8x8x8xf32>
    %122 = vector.shape_cast %121 : vector<1x1x8x8x8xf32> to vector<8x8x8xf32>
    %123 = vector.shape_cast %122 : vector<8x8x8xf32> to vector<64x8xf32>
    %c160 = arith.constant 160 : index
    %c0_143 = arith.constant 0 : index
    %124 = vector.load %arg5[%c160, %c0_143] : memref<216x128xf32, #tpu.memory_space<vmem>>, vector<8x128xf32>
    %cst_144 = arith.constant dense<0.000000e+00> : vector<64x128xf32>
    %125 = tpu.matmul %123, %124, %cst_144 {dimension_numbers = #tpu.dot_dimension_numbers<[1], [0], [0], [1], [0, 0, 1, 1], [], []>} : vector<64x8xf32>, vector<8x128xf32>, vector<64x128xf32> -> vector<64x128xf32>
    %126 = arith.addf %120, %125 : vector<64x128xf32>
    %c0_145 = arith.constant 0 : index
    %c0_146 = arith.constant 0 : index
    %c1_147 = arith.constant 1 : index
    %c0_148 = arith.constant 0 : index
    %c0_149 = arith.constant 0 : index
    %127 = vector.load %arg4[%c0_145, %c0_146, %c1_147, %c0_148, %c0_149] : memref<1x1x10x10x8xf32, #tpu.memory_space<vmem>>, vector<1x1x8x8x8xf32>
    %128 = vector.shape_cast %127 : vector<1x1x8x8x8xf32> to vector<8x8x8xf32>
    %129 = vector.shape_cast %128 : vector<8x8x8xf32> to vector<64x8xf32>
    %c168 = arith.constant 168 : index
    %c0_150 = arith.constant 0 : index
    %130 = vector.load %arg5[%c168, %c0_150] : memref<216x128xf32, #tpu.memory_space<vmem>>, vector<8x128xf32>
    %cst_151 = arith.constant dense<0.000000e+00> : vector<64x128xf32>
    %131 = tpu.matmul %129, %130, %cst_151 {dimension_numbers = #tpu.dot_dimension_numbers<[1], [0], [0], [1], [0, 0, 1, 1], [], []>} : vector<64x8xf32>, vector<8x128xf32>, vector<64x128xf32> -> vector<64x128xf32>
    %132 = arith.addf %126, %131 : vector<64x128xf32>
    %c0_152 = arith.constant 0 : index
    %c0_153 = arith.constant 0 : index
    %c1_154 = arith.constant 1 : index
    %c1_155 = arith.constant 1 : index
    %c0_156 = arith.constant 0 : index
    %133 = vector.load %arg4[%c0_152, %c0_153, %c1_154, %c1_155, %c0_156] : memref<1x1x10x10x8xf32, #tpu.memory_space<vmem>>, vector<1x1x8x8x8xf32>
    %134 = vector.shape_cast %133 : vector<1x1x8x8x8xf32> to vector<8x8x8xf32>
    %135 = vector.shape_cast %134 : vector<8x8x8xf32> to vector<64x8xf32>
    %c176 = arith.constant 176 : index
    %c0_157 = arith.constant 0 : index
    %136 = vector.load %arg5[%c176, %c0_157] : memref<216x128xf32, #tpu.memory_space<vmem>>, vector<8x128xf32>
    %cst_158 = arith.constant dense<0.000000e+00> : vector<64x128xf32>
    %137 = tpu.matmul %135, %136, %cst_158 {dimension_numbers = #tpu.dot_dimension_numbers<[1], [0], [0], [1], [0, 0, 1, 1], [], []>} : vector<64x8xf32>, vector<8x128xf32>, vector<64x128xf32> -> vector<64x128xf32>
    %138 = arith.addf %132, %137 : vector<64x128xf32>
    %c0_159 = arith.constant 0 : index
    %c0_160 = arith.constant 0 : index
    %c1_161 = arith.constant 1 : index
    %c2_162 = arith.constant 2 : index
    %c0_163 = arith.constant 0 : index
    %139 = vector.load %arg4[%c0_159, %c0_160, %c1_161, %c2_162, %c0_163] : memref<1x1x10x10x8xf32, #tpu.memory_space<vmem>>, vector<1x1x8x8x8xf32>
    %140 = vector.shape_cast %139 : vector<1x1x8x8x8xf32> to vector<8x8x8xf32>
    %141 = vector.shape_cast %140 : vector<8x8x8xf32> to vector<64x8xf32>
    %c184 = arith.constant 184 : index
    %c0_164 = arith.constant 0 : index
    %142 = vector.load %arg5[%c184, %c0_164] : memref<216x128xf32, #tpu.memory_space<vmem>>, vector<8x128xf32>
    %cst_165 = arith.constant dense<0.000000e+00> : vector<64x128xf32>
    %143 = tpu.matmul %141, %142, %cst_165 {dimension_numbers = #tpu.dot_dimension_numbers<[1], [0], [0], [1], [0, 0, 1, 1], [], []>} : vector<64x8xf32>, vector<8x128xf32>, vector<64x128xf32> -> vector<64x128xf32>
    %144 = arith.addf %138, %143 : vector<64x128xf32>
    %c0_166 = arith.constant 0 : index
    %c0_167 = arith.constant 0 : index
    %c2_168 = arith.constant 2 : index
    %c0_169 = arith.constant 0 : index
    %c0_170 = arith.constant 0 : index
    %145 = vector.load %arg4[%c0_166, %c0_167, %c2_168, %c0_169, %c0_170] : memref<1x1x10x10x8xf32, #tpu.memory_space<vmem>>, vector<1x1x8x8x8xf32>
    %146 = vector.shape_cast %145 : vector<1x1x8x8x8xf32> to vector<8x8x8xf32>
    %147 = vector.shape_cast %146 : vector<8x8x8xf32> to vector<64x8xf32>
    %c192 = arith.constant 192 : index
    %c0_171 = arith.constant 0 : index
    %148 = vector.load %arg5[%c192, %c0_171] : memref<216x128xf32, #tpu.memory_space<vmem>>, vector<8x128xf32>
    %cst_172 = arith.constant dense<0.000000e+00> : vector<64x128xf32>
    %149 = tpu.matmul %147, %148, %cst_172 {dimension_numbers = #tpu.dot_dimension_numbers<[1], [0], [0], [1], [0, 0, 1, 1], [], []>} : vector<64x8xf32>, vector<8x128xf32>, vector<64x128xf32> -> vector<64x128xf32>
    %150 = arith.addf %144, %149 : vector<64x128xf32>
    %c0_173 = arith.constant 0 : index
    %c0_174 = arith.constant 0 : index
    %c2_175 = arith.constant 2 : index
    %c1_176 = arith.constant 1 : index
    %c0_177 = arith.constant 0 : index
    %151 = vector.load %arg4[%c0_173, %c0_174, %c2_175, %c1_176, %c0_177] : memref<1x1x10x10x8xf32, #tpu.memory_space<vmem>>, vector<1x1x8x8x8xf32>
    %152 = vector.shape_cast %151 : vector<1x1x8x8x8xf32> to vector<8x8x8xf32>
    %153 = vector.shape_cast %152 : vector<8x8x8xf32> to vector<64x8xf32>
    %c200 = arith.constant 200 : index
    %c0_178 = arith.constant 0 : index
    %154 = vector.load %arg5[%c200, %c0_178] : memref<216x128xf32, #tpu.memory_space<vmem>>, vector<8x128xf32>
    %cst_179 = arith.constant dense<0.000000e+00> : vector<64x128xf32>
    %155 = tpu.matmul %153, %154, %cst_179 {dimension_numbers = #tpu.dot_dimension_numbers<[1], [0], [0], [1], [0, 0, 1, 1], [], []>} : vector<64x8xf32>, vector<8x128xf32>, vector<64x128xf32> -> vector<64x128xf32>
    %156 = arith.addf %150, %155 : vector<64x128xf32>
    %c0_180 = arith.constant 0 : index
    %c0_181 = arith.constant 0 : index
    %c2_182 = arith.constant 2 : index
    %c2_183 = arith.constant 2 : index
    %c0_184 = arith.constant 0 : index
    %157 = vector.load %arg4[%c0_180, %c0_181, %c2_182, %c2_183, %c0_184] : memref<1x1x10x10x8xf32, #tpu.memory_space<vmem>>, vector<1x1x8x8x8xf32>
    %158 = vector.shape_cast %157 : vector<1x1x8x8x8xf32> to vector<8x8x8xf32>
    %159 = vector.shape_cast %158 : vector<8x8x8xf32> to vector<64x8xf32>
    %c208 = arith.constant 208 : index
    %c0_185 = arith.constant 0 : index
    %160 = vector.load %arg5[%c208, %c0_185] : memref<216x128xf32, #tpu.memory_space<vmem>>, vector<8x128xf32>
    %cst_186 = arith.constant dense<0.000000e+00> : vector<64x128xf32>
    %161 = tpu.matmul %159, %160, %cst_186 {dimension_numbers = #tpu.dot_dimension_numbers<[1], [0], [0], [1], [0, 0, 1, 1], [], []>} : vector<64x8xf32>, vector<8x128xf32>, vector<64x128xf32> -> vector<64x128xf32>
    %162 = arith.addf %156, %161 : vector<64x128xf32>
    %c0_187 = arith.constant 0 : index
    %c0_188 = arith.constant 0 : index
    %163 = vector.load %arg6[%c0_187, %c0_188] : memref<1x128xf32, #tpu.memory_space<vmem>>, vector<1x128xf32>
    %164 = vector.broadcast %163 : vector<1x128xf32> to vector<64x128xf32>
    %165 = arith.addf %162, %164 : vector<64x128xf32>
    %c0_189 = arith.constant 0 : index
    %c0_190 = arith.constant 0 : index
    %c0_191 = arith.constant 0 : index
    %166 = vector.load %arg7[%c0_189, %c0_190, %c0_191] : memref<1x64x128xf32, #tpu.memory_space<vmem>>, vector<1x64x128xf32>
    %167 = vector.shape_cast %166 : vector<1x64x128xf32> to vector<64x128xf32>
    %168 = vector.shape_cast %165 : vector<64x128xf32> to vector<1x64x128xf32>
    tpu.vector_store %arg7[%c0_189, %c0_190, %c0_191], %168 {strides = array<i32>} : memref<1x64x128xf32, #tpu.memory_space<vmem>>, vector<1x64x128xf32>,
    %cst_192 = arith.constant dense<0.000000e+00> : vector<128xf32>
    %169 = vector.multi_reduction <add>, %165, %cst_192 [0] : vector<64x128xf32> to vector<128xf32>
    %170 = vector.shape_cast %169 : vector<128xf32> to vector<1x128xf32>
    %171 = arith.mulf %165, %165 : vector<64x128xf32>
    %cst_193 = arith.constant dense<0.000000e+00> : vector<128xf32>
    %172 = vector.multi_reduction <add>, %171, %cst_193 [0] : vector<64x128xf32> to vector<128xf32>
    %173 = vector.shape_cast %172 : vector<128xf32> to vector<1x128xf32>
    %174 = tpu.iota {dimensions = array<i32: 0>} : vector<8x128xi32>
    %c0_i32 = arith.constant 0 : i32
    %175 = vector.broadcast %c0_i32 : i32 to vector<8x128xi32>
    %176 = arith.cmpi eq, %174, %175 : vector<8x128xi32>
    %c1_i32 = arith.constant 1 : i32
    %177 = vector.broadcast %c1_i32 : i32 to vector<8x128xi32>
    %178 = arith.cmpi eq, %174, %177 : vector<8x128xi32>
    %cst_194 = arith.constant 0.000000e+00 : f32
    %179 = vector.shape_cast %173 : vector<1x128xf32> to vector<1x128xf32>
    %180 = vector.broadcast %179 : vector<1x128xf32> to vector<8x128xf32>
    %181 = vector.broadcast %cst_194 : f32 to vector<8x128xf32>
    %182 = arith.select %178, %180, %181 : vector<8x128xi1>, vector<8x128xf32>
    %183 = vector.shape_cast %170 : vector<1x128xf32> to vector<1x128xf32>
    %184 = vector.broadcast %183 : vector<1x128xf32> to vector<8x128xf32>
    %185 = arith.select %176, %184, %182 : vector<8x128xi1>, vector<8x128xf32>
    %c0_195 = arith.constant 0 : index
    %c0_196 = arith.constant 0 : index
    %c0_197 = arith.constant 0 : index
    %c0_198 = arith.constant 0 : index
    %186 = vector.load %arg8[%c0_195, %c0_196, %c0_197, %c0_198] : memref<1x1x8x128xf32, #tpu.memory_space<vmem>>, vector<1x1x8x128xf32>
    %187 = vector.shape_cast %186 : vector<1x1x8x128xf32> to vector<8x128xf32>
    %188 = vector.shape_cast %185 : vector<8x128xf32> to vector<1x1x8x128xf32>
    tpu.vector_store %arg8[%c0_195, %c0_196, %c0_197, %c0_198], %188 {strides = array<i32>} : memref<1x1x8x128xf32, #tpu.memory_space<vmem>>, vector<1x1x8x128xf32>,
    return
  }
  func.func @transform_0(%arg0: i32, %arg1: i32) -> (i32, i32, i32, i32, i32) {
    %c0_i32 = arith.constant 0 : i32
    %c0_i32_0 = arith.constant 0 : i32
    %c0_i32_1 = arith.constant 0 : i32
    %c0_i32_2 = arith.constant 0 : i32
    return %arg0, %arg1, %c0_i32, %c0_i32_0, %c0_i32_1 : i32, i32, i32, i32, i32
  }
  func.func @transform_1(%arg0: i32, %arg1: i32) -> (i32, i32, i32, i32, i32) {
    %c1_i32 = arith.constant 1 : i32
    %0 = arith.addi %arg1, %c1_i32 : i32
    %c0_i32 = arith.constant 0 : i32
    %c0_i32_0 = arith.constant 0 : i32
    %c0_i32_1 = arith.constant 0 : i32
    %c0_i32_2 = arith.constant 0 : i32
    return %arg0, %0, %c0_i32, %c0_i32_0, %c0_i32_1 : i32, i32, i32, i32, i32
  }
  func.func @transform_2(%arg0: i32, %arg1: i32) -> (i32, i32, i32, i32, i32) {
    %c2_i32 = arith.constant 2 : i32
    %0 = arith.addi %arg1, %c2_i32 : i32
    %c0_i32 = arith.constant 0 : i32
    %c0_i32_0 = arith.constant 0 : i32
    %c0_i32_1 = arith.constant 0 : i32
    %c0_i32_2 = arith.constant 0 : i32
    return %arg0, %0, %c0_i32, %c0_i32_0, %c0_i32_1 : i32, i32, i32, i32, i32
  }
  func.func @transform_3(%arg0: i32, %arg1: i32) -> (i32, i32) {
    %c0_i32 = arith.constant 0 : i32
    %c0_i32_0 = arith.constant 0 : i32
    %c0_i32_1 = arith.constant 0 : i32
    return %c0_i32, %c0_i32_0 : i32, i32
  }
  func.func @transform_4(%arg0: i32, %arg1: i32) -> (i32, i32) {
    %c0_i32 = arith.constant 0 : i32
    %c0_i32_0 = arith.constant 0 : i32
    %c0_i32_1 = arith.constant 0 : i32
    return %c0_i32, %c0_i32_0 : i32, i32
  }
  func.func @transform_5(%arg0: i32, %arg1: i32) -> (i32, i32, i32) {
    %c0_i32 = arith.constant 0 : i32
    %c0_i32_0 = arith.constant 0 : i32
    return %arg0, %arg1, %c0_i32 : i32, i32, i32
  }
  func.func @transform_6(%arg0: i32, %arg1: i32) -> (i32, i32, i32, i32) {
    %c0_i32 = arith.constant 0 : i32
    %c0_i32_0 = arith.constant 0 : i32
    %c0_i32_1 = arith.constant 0 : i32
    return %arg0, %arg1, %c0_i32, %c0_i32_0 : i32, i32, i32, i32
  }
}

module attributes {stable_mosaic.version = 11 : i64} {
  func.func @bn_lrelu_kernel(%arg0: i32, %arg1: i32, %arg2: memref<1x512x128xf32, #tpu.memory_space<vmem>>, %arg3: memref<1x128xf32, #tpu.memory_space<vmem>>, %arg4: memref<1x128xf32, #tpu.memory_space<vmem>>, %arg5: memref<1x512x128xf32, #tpu.memory_space<vmem>>) attributes {dimension_semantics = [#tpu.dimension_semantics<parallel>, #tpu.dimension_semantics<parallel>], iteration_bounds = array<i64: 2, 1>, scalar_prefetch = 0 : i64, scratch_operands = 0 : i64, tpu.core_type = #tpu.core_type<tc>, window_params = [{transform_indices = @transform_0, window_bounds = array<i64: 1, 512, 128>}, {pipeline_mode = #tpu.pipeline_mode<synchronous>, transform_indices = @transform_1, window_bounds = array<i64: 1, 128>}, {pipeline_mode = #tpu.pipeline_mode<synchronous>, transform_indices = @transform_2, window_bounds = array<i64: 1, 128>}, {transform_indices = @transform_3, window_bounds = array<i64: 1, 512, 128>}]} {
    %c0 = arith.constant 0 : index
    %c0_0 = arith.constant 0 : index
    %c0_1 = arith.constant 0 : index
    %0 = vector.load %arg2[%c0, %c0_0, %c0_1] : memref<1x512x128xf32, #tpu.memory_space<vmem>>, vector<1x512x128xf32>
    %c0_2 = arith.constant 0 : index
    %c0_3 = arith.constant 0 : index
    %1 = vector.load %arg3[%c0_2, %c0_3] : memref<1x128xf32, #tpu.memory_space<vmem>>, vector<1x128xf32>
    %2 = vector.shape_cast %1 : vector<1x128xf32> to vector<1x1x128xf32>
    %3 = vector.broadcast %2 : vector<1x1x128xf32> to vector<1x512x128xf32>
    %4 = arith.mulf %0, %3 : vector<1x512x128xf32>
    %c0_4 = arith.constant 0 : index
    %c0_5 = arith.constant 0 : index
    %5 = vector.load %arg4[%c0_4, %c0_5] : memref<1x128xf32, #tpu.memory_space<vmem>>, vector<1x128xf32>
    %6 = vector.shape_cast %5 : vector<1x128xf32> to vector<1x1x128xf32>
    %7 = vector.broadcast %6 : vector<1x1x128xf32> to vector<1x512x128xf32>
    %8 = arith.addf %4, %7 : vector<1x512x128xf32>
    %cst = arith.constant 0.000000e+00 : f32
    %9 = vector.broadcast %cst : f32 to vector<1x512x128xf32>
    %10 = arith.cmpf oge, %8, %9 : vector<1x512x128xf32>
    %cst_6 = arith.constant 0.00999999977 : f32
    %11 = vector.broadcast %cst_6 : f32 to vector<1x512x128xf32>
    %12 = arith.mulf %11, %8 : vector<1x512x128xf32>
    %13 = arith.select %10, %8, %12 : vector<1x512x128xi1>, vector<1x512x128xf32>
    %c0_7 = arith.constant 0 : index
    %c0_8 = arith.constant 0 : index
    %c0_9 = arith.constant 0 : index
    %14 = vector.load %arg5[%c0_7, %c0_8, %c0_9] : memref<1x512x128xf32, #tpu.memory_space<vmem>>, vector<1x512x128xf32>
    tpu.vector_store %arg5[%c0_7, %c0_8, %c0_9], %13 {strides = array<i32>} : memref<1x512x128xf32, #tpu.memory_space<vmem>>, vector<1x512x128xf32>,
    return
  }
  func.func @transform_0(%arg0: i32, %arg1: i32) -> (i32, i32, i32) {
    %c0_i32 = arith.constant 0 : i32
    %c0_i32_0 = arith.constant 0 : i32
    return %arg0, %arg1, %c0_i32 : i32, i32, i32
  }
  func.func @transform_1(%arg0: i32, %arg1: i32) -> (i32, i32) {
    %c0_i32 = arith.constant 0 : i32
    %c0_i32_0 = arith.constant 0 : i32
    %c0_i32_1 = arith.constant 0 : i32
    return %c0_i32, %c0_i32_0 : i32, i32
  }
  func.func @transform_2(%arg0: i32, %arg1: i32) -> (i32, i32) {
    %c0_i32 = arith.constant 0 : i32
    %c0_i32_0 = arith.constant 0 : i32
    %c0_i32_1 = arith.constant 0 : i32
    return %c0_i32, %c0_i32_0 : i32, i32
  }
  func.func @transform_3(%arg0: i32, %arg1: i32) -> (i32, i32, i32) {
    %c0_i32 = arith.constant 0 : i32
    %c0_i32_0 = arith.constant 0 : i32
    return %arg0, %arg1, %c0_i32 : i32, i32, i32
  }
}

</mosaic_0001>

<bundles_post_ra>
// kernel: cbr_conv3d_forward.3
= control target key start
LH: loop header
LB: loop body
LE: loop exit
PB: predicated region body
PF: predicated region fallthrough
CT: control target
= control target key end

     0   :  { %s842_s12 = smov 0   ;;  %s844_s13 = smov 0   ;;  %s1323_s0 = inlined_call_operand.vmem [shape: f32[2,512,128], index: 0, kind: input, shape index: {}, may-alias: {0,3}]   ;;  %s1324_s1 = inlined_call_operand.vmem [shape: f32[1,128], index: 1, kind: input, shape index: {}]   ;;  %s1325_s2 = inlined_call_operand.vmem [shape: f32[1,128], index: 2, kind: input, shape index: {}]   ;;  %s1326_s3 = inlined_call_operand.vmem [shape: f32[2,512,128], index: 3, kind: output, shape index: {}, may-alias: {0,3}]  }
   0x1   :  { %s846_s14 = smov 0  }
   0x2 LB: > { %s25_s15 = sadd.s32 1, %s816_s13  ;;  %p763_p0 = scmp.ge.s32.totalorder %s820_s14, 1  ;;  %s820_s14 = sphi %s846_s14, %s13_s14   ;;  %s816_s13 = sphi %s844_s13, %s1342_s13   ;;  %s812_s12 = sphi %s842_s12, %s1341_s12  }
   0x3   : > { %p27_p1 = scmp.ge.s32.totalorder %s25_s15, 2  ;;  %p158_p2 = scmp.lt.s32.totalorder %s820_s14, 3 }
   0x5   : > { %s1344_s15 = smov (%p27_p1, %s25_s15), 0  ;;  %p159_p3 = pnand %p763_p0, %p158_p2 }
   0x7   : > { %162 = sbr.rel (%p159_p3) target bundleno = 105 (0x69), region = 32 }
   0xe   : > { %p191_p4 = scmp.lt.s32.totalorder %s812_s12, 1  ;;  %v866_v0 = vld [vmem:[%s1324_s1] ss:$0 sm:$0xff] }
   0xf   : > { %v878_v1 = vld [vmem:[%s1325_s2] ss:$0 sm:$0xff] }
  0x10   : > { %s1346_s12 = smov (!%p191_p4, %s812_s12), 1 }
  0x11   : > { %s772_s16 = sshll.u32 %s1346_s12, 9 }
  0x12   : > { %s873_s21 = scalar_lea.vmem %s1323_s0, %s772_s16  ;;  %s959_s26 = scalar_lea.vmem %s1326_s3, %s772_s16 }
  0x13   : > { %v210_v2 = vld [vmem:[%s873_s21] sm:$0xff]  ;;  %v211_v3 = vld [vmem:[%s873_s21 + $0x8] sm:$0xff]  ;;  %v212_v4 = vld [vmem:[%s873_s21 + $0x10] sm:$0xff] }
  0x14   : > { %v213_v5 = vld [vmem:[%s873_s21 + $0x18] sm:$0xff]  ;;  %v214_v6 = vld [vmem:[%s873_s21 + $0x20] sm:$0xff]  ;;  %v215_v7 = vld [vmem:[%s873_s21 + $0x28] sm:$0xff]  ;;  %v281_v8 = vmul.f32 %v866_v0, %v210_v2  ;;  %v282_v9 = vmul.f32 %v866_v0, %v211_v3  ;;  %v283_v10 = vmul.f32 %v866_v0, %v212_v4 }
  0x15   : > { %v216_v11 = vld [vmem:[%s873_s21 + $0x30] sm:$0xff]  ;;  %v217_v12 = vld [vmem:[%s873_s21 + $0x38] sm:$0xff]  ;;  %v218_v13 = vld [vmem:[%s873_s21 + $0x40] sm:$0xff]  ;;  %v284_v14 = vmul.f32 %v866_v0, %v213_v5  ;;  %v285_v15 = vmul.f32 %v866_v0, %v214_v6  ;;  %v286_v16 = vmul.f32 %v866_v0, %v215_v7 }
  0x16   : > { %v219_v17 = vld [vmem:[%s873_s21 + $0x48] sm:$0xff]  ;;  %v352_v18 = vadd.f32 %v878_v1, %v281_v8  ;;  %v353_v19 = vadd.f32 %v878_v1, %v282_v9  ;;  %v354_v20 = vadd.f32 %v878_v1, %v283_v10  ;;  %v287_v21 = vmul.f32 %v866_v0, %v216_v11  ;;  %v220_v29 = vld [vmem:[%s873_s21 + $0x50] sm:$0xff]  ;;  %v221_v33 = vld [vmem:[%s873_s21 + $0x58] sm:$0xff] }
  0x17   : > { %v355_v22 = vadd.f32 %v878_v1, %v284_v14  ;;  %v356_v23 = vadd.f32 %v878_v1, %v285_v15  ;;  %v357_v24 = vadd.f32 %v878_v1, %v286_v16  ;;  %v288_v25 = vmul.f32 %v866_v0, %v217_v12  ;;  %v222_v43 = vld [vmem:[%s873_s21 + $0x60] sm:$0xff]  ;;  %v223_v47 = vld [vmem:[%s873_s21 + $0x68] sm:$0xff]  ;;  %v224_v57 = vld [vmem:[%s873_s21 + $0x70] sm:$0xff] }
  0x18   : > { %vm416_vm0 = vcmp.ge.f32.partialorder %v352_v18, 0.0  ;;  %v480_v26 = vmul.f32 0.01, %v352_v18  ;;  %v358_v27 = vadd.f32 %v878_v1, %v287_v21  ;;  %v289_v28 = vmul.f32 %v866_v0, %v218_v13  ;;  %v225_v61 = vld [vmem:[%s873_s21 + $0x78] sm:$0xff]  ;;  %v226_v3 = vld [vmem:[%s873_s21 + $0x80] sm:$0xff]  ;;  %v227_v4 = vld [vmem:[%s873_s21 + $0x88] sm:$0xff] }
  0x19   : > { %vm417_vm1 = vcmp.ge.f32.partialorder %v353_v19, 0.0  ;;  %v481_v30 = vmul.f32 0.01, %v353_v19  ;;  %v359_v31 = vadd.f32 %v878_v1, %v288_v25  ;;  %v290_v32 = vmul.f32 %v866_v0, %v219_v17  ;;  %v228_v8 = vld [vmem:[%s873_s21 + $0x90] sm:$0xff]  ;;  %v229_v9 = vld [vmem:[%s873_s21 + $0x98] sm:$0xff]  ;;  %v962_v16 = vld [vmem:[%s873_s21 + $0xa0] sm:$0xff] }
  0x1a   : > { %v910_v34 = vsel %vm416_vm0, %v352_v18, %v480_v26  ;;  %vm418_vm2 = vcmp.ge.f32.partialorder %v354_v20, 0.0  ;;  %v482_v35 = vmul.f32 0.01, %v354_v20  ;;  %v360_v36 = vadd.f32 %v878_v1, %v289_v28  ;;  %v965_v17 = vld [vmem:[%s873_s21 + $0xa8] sm:$0xff]  ;;  %v968_v18 = vld [vmem:[%s873_s21 + $0xb0] sm:$0xff]  ;;  %v998_v28 = vld [vmem:[%s873_s21 + $0x100] sm:$0xff] }
  0x1b   : > { %v913_v37 = vsel %vm417_vm1, %v353_v19, %v481_v30  ;;  %vm419_vm3 = vcmp.ge.f32.partialorder %v355_v22, 0.0  ;;  %v483_v38 = vmul.f32 0.01, %v355_v22  ;;  %v361_v39 = vadd.f32 %v878_v1, %v290_v32  ;;  %v971_v19 = vld [vmem:[%s873_s21 + $0xb8] sm:$0xff]  ;;  %v977_v21 = vld [vmem:[%s873_s21 + $0xc8] sm:$0xff]  ;;  %v992_v26 = vld [vmem:[%s873_s21 + $0xf0] sm:$0xff] }
  0x1c   : > { %v916_v40 = vsel %vm418_vm2, %v354_v20, %v482_v35  ;;  %vm420_vm4 = vcmp.ge.f32.partialorder %v356_v23, 0.0  ;;  %v484_v41 = vmul.f32 0.01, %v356_v23  ;;  %v291_v42 = vmul.f32 %v866_v0, %v220_v29  ;;  %v974_v20 = vld [vmem:[%s873_s21 + $0xc0] sm:$0xff]  ;;  %v989_v25 = vld [vmem:[%s873_s21 + $0xe8] sm:$0xff]  ;;  %v1004_v30 = vld [vmem:[%s873_s21 + $0x110] sm:$0xff] }
  0x1d   : > { %v920_v44 = vsel %vm419_vm3, %v355_v22, %v483_v38  ;;  %vm421_vm5 = vcmp.ge.f32.partialorder %v357_v24, 0.0  ;;  %v485_v45 = vmul.f32 0.01, %v357_v24  ;;  %v292_v46 = vmul.f32 %v866_v0, %v221_v33  ;;  %v980_v22 = vld [vmem:[%s873_s21 + $0xd0] sm:$0xff]  ;;  %v1001_v29 = vld [vmem:[%s873_s21 + $0x108] sm:$0xff]  ;;  %v1010_v32 = vld [vmem:[%s873_s21 + $0x120] sm:$0xff] }
  0x1e   : > { %v924_v48 = vsel %vm420_vm4, %v356_v23, %v484_v41  ;;  %vm422_vm6 = vcmp.ge.f32.partialorder %v358_v27, 0.0  ;;  %v486_v49 = vmul.f32 0.01, %v358_v27  ;;  %v362_v50 = vadd.f32 %v878_v1, %v291_v42  ;;  %v983_v23 = vld [vmem:[%s873_s21 + $0xd8] sm:$0xff]  ;;  %v1013_v33 = vld [vmem:[%s873_s21 + $0x128] sm:$0xff]  ;;  %v1016_v35 = vld [vmem:[%s873_s21 + $0x130] sm:$0xff] }
  0x1f   : > { %v927_v51 = vsel %vm421_vm5, %v357_v24, %v485_v45  ;;  %vm423_vm7 = vcmp.ge.f32.partialorder %v359_v31, 0.0  ;;  %v487_v52 = vmul.f32 0.01, %v359_v31  ;;  %v363_v53 = vadd.f32 %v878_v1, %v292_v46  ;;  %v986_v24 = vld [vmem:[%s873_s21 + $0xe0] sm:$0xff]  ;;  %v1028_v41 = vld [vmem:[%s873_s21 + $0x150] sm:$0xff]  ;;  %v1031_v42 = vld [vmem:[%s873_s21 + $0x158] sm:$0xff] }
  0x20   : > { %v930_v54 = vsel %vm422_vm6, %v358_v27, %v486_v49  ;;  %vm424_vm8 = vcmp.ge.f32.partialorder %v360_v36, 0.0  ;;  %v488_v55 = vmul.f32 0.01, %v360_v36  ;;  %v293_v56 = vmul.f32 %v866_v0, %v222_v43  ;;  %v995_v27 = vld [vmem:[%s873_s21 + $0xf8] sm:$0xff]  ;;  %v1022_v38 = vld [vmem:[%s873_s21 + $0x140] sm:$0xff]  ;;  %v1037_v45 = vld [vmem:[%s873_s21 + $0x168] sm:$0xff] }
  0x21   : > { %v934_v58 = vsel %vm423_vm7, %v359_v31, %v487_v52  ;;  %vm425_vm9 = vcmp.ge.f32.partialorder %v361_v39, 0.0  ;;  %v489_v59 = vmul.f32 0.01, %v361_v39  ;;  %v294_v60 = vmul.f32 %v866_v0, %v223_v47  ;;  %v1007_v31 = vld [vmem:[%s873_s21 + $0x118] sm:$0xff]  ;;  %v1034_v43 = vld [vmem:[%s873_s21 + $0x160] sm:$0xff]  ;;  %v1040_v46 = vld [vmem:[%s873_s21 + $0x170] sm:$0xff] }
  0x22   : > { %v938_v62 = vsel %vm424_vm8, %v360_v36, %v488_v55  ;;  %vm426_vm10 = vcmp.ge.f32.partialorder %v362_v50, 0.0  ;;  %v490_v63 = vmul.f32 0.01, %v362_v50  ;;  %v364_v2 = vadd.f32 %v878_v1, %v293_v56  ;;  %v1019_v36 = vld [vmem:[%s873_s21 + $0x138] sm:$0xff]  ;;  %v1046_v49 = vld [vmem:[%s873_s21 + $0x180] sm:$0xff]  ;;  %v1052_v52 = vld [vmem:[%s873_s21 + $0x190] sm:$0xff] }
  0x23   : > { %v943_v5 = vsel %vm425_vm9, %v361_v39, %v489_v59  ;;  %vm427_vm11 = vcmp.ge.f32.partialorder %v363_v53, 0.0  ;;  %v491_v6 = vmul.f32 0.01, %v363_v53  ;;  %v365_v7 = vadd.f32 %v878_v1, %v294_v60  ;;  %v1025_v39 = vld [vmem:[%s873_s21 + $0x148] sm:$0xff]  ;;  %v1043_v47 = vld [vmem:[%s873_s21 + $0x178] sm:$0xff]  ;;  %v1058_v55 = vld [vmem:[%s873_s21 + $0x1a0] sm:$0xff] }
  0x24   : > { %v948_v10 = vsel %vm426_vm10, %v362_v50, %v490_v63  ;;  %vm428_vm12 = vcmp.ge.f32.partialorder %v364_v2, 0.0  ;;  %v492_v11 = vmul.f32 0.01, %v364_v2  ;;  %v295_v12 = vmul.f32 %v866_v0, %v224_v57  ;;  %v1049_v50 = vld [vmem:[%s873_s21 + $0x188] sm:$0xff]  ;;  %1328 = vst [vmem:[#allocation3_spill] sm:$0xff] %v1058_v55  ;;  %v1064_v57 = vld [vmem:[%s873_s21 + $0x1b0] sm:$0xff] }
  0x25   : > { %v951_v13 = vsel %vm427_vm11, %v363_v53, %v491_v6  ;;  %vm429_vm13 = vcmp.ge.f32.partialorder %v365_v7, 0.0  ;;  %v493_v14 = vmul.f32 0.01, %v365_v7  ;;  %v296_v15 = vmul.f32 %v866_v0, %v225_v61  ;;  %v1055_v53 = vld [vmem:[%s873_s21 + $0x198] sm:$0xff]  ;;  %v1061_v56 = vld [vmem:[%s873_s21 + $0x1a8] sm:$0xff]  ;;  %1330 = vst [vmem:[#allocation5_spill] sm:$0xff] %v1064_v57 }
  0x26   : > { %1327 = vst [vmem:[#allocation2_spill] sm:$0xff] %v1055_v53  ;;  %1329 = vst [vmem:[#allocation4_spill] sm:$0xff] %v1061_v56  ;;  %v1067_v59 = vld [vmem:[%s873_s21 + $0x1b8] sm:$0xff]  ;;  %v1070_v60 = vld [vmem:[%s873_s21 + $0x1c0] sm:$0xff]  ;;  %v556_v63 = vsel %vm428_vm12, %v364_v2, %v492_v11  ;;  %v366_v6 = vadd.f32 %v878_v1, %v295_v12  ;;  %v297_v53 = vmul.f32 %v866_v0, %v226_v3 }
  0x27   : > { %1331 = vst [vmem:[#allocation6_spill] sm:$0xff] %v1067_v59  ;;  %v1073_v61 = vld [vmem:[%s873_s21 + $0x1c8] sm:$0xff]  ;;  %v298_v56 = vmul.f32 %v866_v0, %v227_v4  ;;  %v1080_v55 = vld [vmem:[%s873_s21 + $0x1d0] sm:$0xff]  ;;  %v1083_v57 = vld [vmem:[%s873_s21 + $0x1d8] sm:$0xff]  ;;  %v367_v2 = vadd.f32 %v878_v1, %v296_v15  ;;  %v299_v3 = vmul.f32 %v866_v0, %v228_v8  ;;  %v300_v4 = vmul.f32 %v866_v0, %v229_v9 }
  0x28   : > { %1332 = vst [vmem:[#allocation7_spill] sm:$0xff] %v1073_v61  ;;  %v1086_v59 = vld [vmem:[%s873_s21 + $0x1e0] sm:$0xff]  ;;  %v557_v61 = vsel %vm429_vm13, %v365_v7, %v493_v14  ;;  %v1093_v11 = vld [vmem:[%s873_s21 + $0x1e8] sm:$0xff]  ;;  %v1096_v12 = vld [vmem:[%s873_s21 + $0x1f0] sm:$0xff]  ;;  %vm430_vm14 = vcmp.ge.f32.partialorder %v366_v6, 0.0  ;;  %v368_v14 = vadd.f32 %v878_v1, %v297_v53  ;;  %v301_v9 = vmul.f32 %v866_v0, %v962_v16 }
  0x29   : > { %1333 = vst [vmem:[#allocation8_spill] sm:$0xff] %v1086_v59  ;;  %v1099_v59 = vld [vmem:[%s873_s21 + $0x1f8] sm:$0xff]  ;;  %v494_v7 = vmul.f32 0.01, %v366_v6  ;;  %v369_v8 = vadd.f32 %v878_v1, %v298_v56  ;;  %vm431_vm15 = vcmp.ge.f32.partialorder %v367_v2, 0.0  ;;  %v302_v15 = vmul.f32 %v866_v0, %v965_v17 }
  0x2a   : > { %608 = vst [vmem:[%s959_s26] sm:$0xff] %v910_v34  ;;  %609 = vst [vmem:[%s959_s26 + $0x8] sm:$0xff] %v913_v37  ;;  %v495_v34 = vmul.f32 0.01, %v367_v2  ;;  %v370_v37 = vadd.f32 %v878_v1, %v299_v3  ;;  %vm432_vm0 = vcmp.ge.f32.partialorder %v368_v14, 0.0  ;;  %v303_v53 = vmul.f32 %v866_v0, %v968_v18 }
  0x2b   : > { %610 = vst [vmem:[%s959_s26 + $0x10] sm:$0xff] %v916_v40  ;;  %611 = vst [vmem:[%s959_s26 + $0x18] sm:$0xff] %v920_v44  ;;  %v371_v40 = vadd.f32 %v878_v1, %v300_v4  ;;  %v558_v44 = vsel %vm430_vm14, %v366_v6, %v494_v7  ;;  %vm433_vm1 = vcmp.ge.f32.partialorder %v369_v8, 0.0  ;;  %v305_v16 = vmul.f32 %v866_v0, %v974_v20 }
  0x2c   : > { %612 = vst [vmem:[%s959_s26 + $0x20] sm:$0xff] %v924_v48  ;;  %613 = vst [vmem:[%s959_s26 + $0x28] sm:$0xff] %v927_v51  ;;  %v496_v48 = vmul.f32 0.01, %v368_v14  ;;  %v559_v51 = vsel %vm431_vm15, %v367_v2, %v495_v34  ;;  %vm434_vm2 = vcmp.ge.f32.partialorder %v370_v37, 0.0  ;;  %v373_v6 = vadd.f32 %v878_v1, %v302_v15 }
  0x2d   : > { %614 = vst [vmem:[%s959_s26 + $0x30] sm:$0xff] %v930_v54  ;;  %615 = vst [vmem:[%s959_s26 + $0x38] sm:$0xff] %v934_v58  ;;  %v497_v54 = vmul.f32 0.01, %v369_v8  ;;  %v498_v58 = vmul.f32 0.01, %v370_v37  ;;  %v374_v17 = vadd.f32 %v878_v1, %v303_v53  ;;  %v306_v18 = vmul.f32 %v866_v0, %v977_v21 }
  0x2e   : > { %616 = vst [vmem:[%s959_s26 + $0x40] sm:$0xff] %v938_v62  ;;  %617 = vst [vmem:[%s959_s26 + $0x48] sm:$0xff] %v943_v5  ;;  %v560_v62 = vsel %vm432_vm0, %v368_v14, %v496_v48  ;;  %vm435_vm3 = vcmp.ge.f32.partialorder %v371_v40, 0.0  ;;  %v499_v5 = vmul.f32 0.01, %v371_v40  ;;  %v307_v2 = vmul.f32 %v866_v0, %v980_v22 }
  0x2f   : > { %618 = vst [vmem:[%s959_s26 + $0x50] sm:$0xff] %v948_v10  ;;  %619 = vst [vmem:[%s959_s26 + $0x58] sm:$0xff] %v951_v13  ;;  %v561_v10 = vsel %vm433_vm1, %v369_v8, %v497_v54  ;;  %v562_v13 = vsel %vm434_vm2, %v370_v37, %v498_v58  ;;  %v376_v20 = vadd.f32 %v878_v1, %v305_v16  ;;  %vm437_vm5 = vcmp.ge.f32.partialorder %v373_v6, 0.0 }
  0x30   : > { %620 = vst [vmem:[%s959_s26 + $0x60] sm:$0xff] %v556_v63  ;;  %621 = vst [vmem:[%s959_s26 + $0x68] sm:$0xff] %v557_v61  ;;  %v563_v56 = vsel %vm435_vm3, %v371_v40, %v499_v5  ;;  %v372_v61 = vadd.f32 %v878_v1, %v301_v9  ;;  %v304_v63 = vmul.f32 %v866_v0, %v971_v19  ;;  %v501_v4 = vmul.f32 0.01, %v373_v6 }
  0x31   : > { %622 = vst [vmem:[%s959_s26 + $0x70] sm:$0xff] %v558_v44  ;;  %623 = vst [vmem:[%s959_s26 + $0x78] sm:$0xff] %v559_v51  ;;  %vm438_vm6 = vcmp.ge.f32.partialorder %v374_v17, 0.0  ;;  %v502_v7 = vmul.f32 0.01, %v374_v17  ;;  %vm440_vm8 = vcmp.ge.f32.partialorder %v376_v20, 0.0  ;;  %v377_v37 = vadd.f32 %v878_v1, %v306_v18 }
  0x32   : > { %624 = vst [vmem:[%s959_s26 + $0x80] sm:$0xff] %v560_v62  ;;  %625 = vst [vmem:[%s959_s26 + $0x88] sm:$0xff] %v561_v10  ;;  %vm436_vm4 = vcmp.ge.f32.partialorder %v372_v61, 0.0  ;;  %v500_v3 = vmul.f32 0.01, %v372_v61  ;;  %v375_v19 = vadd.f32 %v878_v1, %v304_v63  ;;  %v565_v21 = vsel %vm437_vm5, %v373_v6, %v501_v4 }
  0x33   : > { %626 = vst [vmem:[%s959_s26 + $0x90] sm:$0xff] %v562_v13  ;;  %627 = vst [vmem:[%s959_s26 + $0x98] sm:$0xff] %v563_v56  ;;  %v566_v22 = vsel %vm438_vm6, %v374_v17, %v502_v7  ;;  %v504_v34 = vmul.f32 0.01, %v376_v20  ;;  %v378_v44 = vadd.f32 %v878_v1, %v307_v2  ;;  %v308_v48 = vmul.f32 %v866_v0, %v983_v23 }
  0x34   : > { %v564_v14 = vsel %vm436_vm4, %v372_v61, %v500_v3  ;;  %vm439_vm7 = vcmp.ge.f32.partialorder %v375_v19, 0.0  ;;  %v503_v8 = vmul.f32 0.01, %v375_v19  ;;  %629 = vst [vmem:[%s959_s26 + $0xa8] sm:$0xff] %v565_v21  ;;  %630 = vst [vmem:[%s959_s26 + $0xb0] sm:$0xff] %v566_v22  ;;  %v309_v51 = vmul.f32 %v866_v0, %v986_v24 }
  0x35   : > { %628 = vst [vmem:[%s959_s26 + $0xa0] sm:$0xff] %v564_v14  ;;  %v568_v54 = vsel %vm440_vm8, %v376_v20, %v504_v34  ;;  %vm441_vm9 = vcmp.ge.f32.partialorder %v377_v37, 0.0  ;;  %v505_v58 = vmul.f32 0.01, %v377_v37  ;;  %v310_v62 = vmul.f32 %v866_v0, %v989_v25 }
  0x36   : > { %v567_v40 = vsel %vm439_vm7, %v375_v19, %v503_v8  ;;  %632 = vst [vmem:[%s959_s26 + $0xc0] sm:$0xff] %v568_v54  ;;  %vm442_vm10 = vcmp.ge.f32.partialorder %v378_v44, 0.0  ;;  %v506_v5 = vmul.f32 0.01, %v378_v44  ;;  %v379_v9 = vadd.f32 %v878_v1, %v308_v48 }
  0x37   : > { %631 = vst [vmem:[%s959_s26 + $0xb8] sm:$0xff] %v567_v40  ;;  %v380_v10 = vadd.f32 %v878_v1, %v309_v51  ;;  %v569_v23 = vsel %vm441_vm9, %v377_v37, %v505_v58  ;;  %v381_v13 = vadd.f32 %v878_v1, %v310_v62  ;;  %v311_v24 = vmul.f32 %v866_v0, %v992_v26 }
  0x38   : > { %v312_v15 = vmul.f32 %v866_v0, %v995_v27  ;;  %633 = vst [vmem:[%s959_s26 + $0xc8] sm:$0xff] %v569_v23  ;;  %v570_v53 = vsel %vm442_vm10, %v378_v44, %v506_v5  ;;  %vm443_vm11 = vcmp.ge.f32.partialorder %v379_v9, 0.0  ;;  %v507_v25 = vmul.f32 0.01, %v379_v9 }
  0x39   : > { %vm444_vm12 = vcmp.ge.f32.partialorder %v380_v10, 0.0  ;;  %634 = vst [vmem:[%s959_s26 + $0xd0] sm:$0xff] %v570_v53  ;;  %v508_v56 = vmul.f32 0.01, %v380_v10  ;;  %vm445_vm13 = vcmp.ge.f32.partialorder %v381_v13, 0.0  ;;  %v382_v63 = vadd.f32 %v878_v1, %v311_v24 }
  0x3a   : > { %v509_v61 = vmul.f32 0.01, %v381_v13  ;;  %v571_v16 = vsel %vm443_vm11, %v379_v9, %v507_v25  ;;  %v383_v26 = vadd.f32 %v878_v1, %v312_v15  ;;  %v313_v6 = vmul.f32 %v866_v0, %v998_v28 }
  0x3b   : > { %v314_v27 = vmul.f32 %v866_v0, %v1001_v29  ;;  %635 = vst [vmem:[%s959_s26 + $0xd8] sm:$0xff] %v571_v16  ;;  %v572_v17 = vsel %vm444_vm12, %v380_v10, %v508_v56  ;;  %vm446_vm14 = vcmp.ge.f32.partialorder %v382_v63, 0.0  ;;  %v510_v2 = vmul.f32 0.01, %v382_v63 }
  0x3c   : > { %v573_v18 = vsel %vm445_vm13, %v381_v13, %v509_v61  ;;  %636 = vst [vmem:[%s959_s26 + $0xe0] sm:$0xff] %v572_v17  ;;  %vm447_vm15 = vcmp.ge.f32.partialorder %v383_v26, 0.0  ;;  %v511_v3 = vmul.f32 0.01, %v383_v26  ;;  %v384_v19 = vadd.f32 %v878_v1, %v313_v6 }
  0x3d   : > { %637 = vst [vmem:[%s959_s26 + $0xe8] sm:$0xff] %v573_v18  ;;  %v385_v20 = vadd.f32 %v878_v1, %v314_v27  ;;  %v574_v4 = vsel %vm446_vm14, %v382_v63, %v510_v2  ;;  %v315_v28 = vmul.f32 %v866_v0, %v1004_v30  ;;  %v316_v29 = vmul.f32 %v866_v0, %v1007_v31 }
  0x3e   : > { %v317_v7 = vmul.f32 %v866_v0, %v1010_v32  ;;  %638 = vst [vmem:[%s959_s26 + $0xf0] sm:$0xff] %v574_v4  ;;  %v575_v14 = vsel %vm447_vm15, %v383_v26, %v511_v3  ;;  %vm448_vm0 = vcmp.ge.f32.partialorder %v384_v19, 0.0  ;;  %v512_v8 = vmul.f32 0.01, %v384_v19 }
  0x3f   : > { %vm449_vm1 = vcmp.ge.f32.partialorder %v385_v20, 0.0  ;;  %639 = vst [vmem:[%s959_s26 + $0xf8] sm:$0xff] %v575_v14  ;;  %v513_v21 = vmul.f32 0.01, %v385_v20  ;;  %v386_v22 = vadd.f32 %v878_v1, %v315_v28  ;;  %v387_v34 = vadd.f32 %v878_v1, %v316_v29 }
  0x40   : > { %v388_v30 = vadd.f32 %v878_v1, %v317_v7  ;;  %v576_v37 = vsel %vm448_vm0, %v384_v19, %v512_v8  ;;  %v318_v31 = vmul.f32 %v866_v0, %v1013_v33  ;;  %v319_v32 = vmul.f32 %v866_v0, %v1016_v35 }
  0x41   : > { %v320_v40 = vmul.f32 %v866_v0, %v1019_v36  ;;  %640 = vst [vmem:[%s959_s26 + $0x100] sm:$0xff] %v576_v37  ;;  %v577_v44 = vsel %vm449_vm1, %v385_v20, %v513_v21  ;;  %vm450_vm2 = vcmp.ge.f32.partialorder %v386_v22, 0.0  ;;  %v514_v48 = vmul.f32 0.01, %v386_v22 }
  0x42   : > { %vm451_vm3 = vcmp.ge.f32.partialorder %v387_v34, 0.0  ;;  %641 = vst [vmem:[%s959_s26 + $0x108] sm:$0xff] %v577_v44  ;;  %v515_v51 = vmul.f32 0.01, %v387_v34  ;;  %vm452_vm4 = vcmp.ge.f32.partialorder %v388_v30, 0.0  ;;  %v389_v33 = vadd.f32 %v878_v1, %v318_v31  ;;  %v1335_v31 = vld [vmem:[#allocation3_spill] sm:$0xff] }
  0x43   : > { %v516_v54 = vmul.f32 0.01, %v388_v30  ;;  %v578_v58 = vsel %vm450_vm2, %v386_v22, %v514_v48  ;;  %v390_v35 = vadd.f32 %v878_v1, %v319_v32  ;;  %v391_v62 = vadd.f32 %v878_v1, %v320_v40 }
  0x44   : > { %v321_v36 = vmul.f32 %v866_v0, %v1022_v38  ;;  %642 = vst [vmem:[%s959_s26 + $0x110] sm:$0xff] %v578_v58  ;;  %v579_v5 = vsel %vm451_vm3, %v387_v34, %v515_v51  ;;  %vm453_vm5 = vcmp.ge.f32.partialorder %v389_v33, 0.0  ;;  %v517_v10 = vmul.f32 0.01, %v389_v33  ;;  %v1336_v58 = vld [vmem:[#allocation4_spill] sm:$0xff] }
  0x45   : > { %v580_v9 = vsel %vm452_vm4, %v388_v30, %v516_v54  ;;  %643 = vst [vmem:[%s959_s26 + $0x118] sm:$0xff] %v579_v5  ;;  %vm454_vm6 = vcmp.ge.f32.partialorder %v390_v35, 0.0  ;;  %v518_v23 = vmul.f32 0.01, %v390_v35  ;;  %vm455_vm7 = vcmp.ge.f32.partialorder %v391_v62, 0.0  ;;  %v1334_v30 = vld [vmem:[#allocation2_spill] sm:$0xff] }
  0x46   : > { %644 = vst [vmem:[%s959_s26 + $0x120] sm:$0xff] %v580_v9  ;;  %v519_v13 = vmul.f32 0.01, %v391_v62  ;;  %v581_v24 = vsel %vm453_vm5, %v389_v33, %v517_v10  ;;  %v392_v15 = vadd.f32 %v878_v1, %v321_v36  ;;  %v322_v38 = vmul.f32 %v866_v0, %v1025_v39 }
  0x47   : > { %v323_v53 = vmul.f32 %v866_v0, %v1028_v41  ;;  %645 = vst [vmem:[%s959_s26 + $0x128] sm:$0xff] %v581_v24  ;;  %v582_v25 = vsel %vm454_vm6, %v390_v35, %v518_v23  ;;  %v324_v61 = vmul.f32 %v866_v0, %v1031_v42  ;;  %v325_v63 = vmul.f32 %v866_v0, %v1034_v43 }
  0x48   : > { %v583_v56 = vsel %vm455_vm7, %v391_v62, %v519_v13  ;;  %646 = vst [vmem:[%s959_s26 + $0x130] sm:$0xff] %v582_v25  ;;  %vm456_vm8 = vcmp.ge.f32.partialorder %v392_v15, 0.0  ;;  %v520_v16 = vmul.f32 0.01, %v392_v15  ;;  %v393_v26 = vadd.f32 %v878_v1, %v322_v38  ;;  %v1337_v62 = vld [vmem:[#allocation5_spill] sm:$0xff] }
  0x49   : > { %647 = vst [vmem:[%s959_s26 + $0x138] sm:$0xff] %v583_v56  ;;  %v394_v39 = vadd.f32 %v878_v1, %v323_v53  ;;  %v395_v41 = vadd.f32 %v878_v1, %v324_v61  ;;  %v396_v6 = vadd.f32 %v878_v1, %v325_v63  ;;  %v326_v42 = vmul.f32 %v866_v0, %v1037_v45  ;;  %v1338_v56 = vld [vmem:[#allocation6_spill] sm:$0xff] }
  0x4a   : > { %v327_v27 = vmul.f32 %v866_v0, %v1040_v46  ;;  %v584_v43 = vsel %vm456_vm8, %v392_v15, %v520_v16  ;;  %vm457_vm9 = vcmp.ge.f32.partialorder %v393_v26, 0.0  ;;  %v521_v17 = vmul.f32 0.01, %v393_v26 }
  0x4b   : > { %vm458_vm10 = vcmp.ge.f32.partialorder %v394_v39, 0.0  ;;  %648 = vst [vmem:[%s959_s26 + $0x140] sm:$0xff] %v584_v43  ;;  %v522_v18 = vmul.f32 0.01, %v394_v39  ;;  %vm459_vm11 = vcmp.ge.f32.partialorder %v395_v41, 0.0  ;;  %vm460_vm12 = vcmp.ge.f32.partialorder %v396_v6, 0.0 }
  0x4c   : > { %v523_v2 = vmul.f32 0.01, %v395_v41  ;;  %v585_v3 = vsel %vm457_vm9, %v393_v26, %v521_v17  ;;  %v524_v19 = vmul.f32 0.01, %v396_v6  ;;  %v397_v20 = vadd.f32 %v878_v1, %v326_v42  ;;  %v1339_v42 = vld [vmem:[#allocation7_spill] sm:$0xff] }
  0x4d   : > { %v398_v45 = vadd.f32 %v878_v1, %v327_v27  ;;  %649 = vst [vmem:[%s959_s26 + $0x148] sm:$0xff] %v585_v3  ;;  %v586_v46 = vsel %vm458_vm10, %v394_v39, %v522_v18  ;;  %v328_v28 = vmul.f32 %v866_v0, %v1043_v47  ;;  %v329_v29 = vmul.f32 %v866_v0, %v1046_v49  ;;  %v1340_v18 = vld [vmem:[#allocation8_spill] sm:$0xff] }
  0x4e   : > { %v587_v4 = vsel %vm459_vm11, %v395_v41, %v523_v2  ;;  %650 = vst [vmem:[%s959_s26 + $0x150] sm:$0xff] %v586_v46  ;;  %v588_v7 = vsel %vm460_vm12, %v396_v6, %v524_v19  ;;  %vm461_vm13 = vcmp.ge.f32.partialorder %v397_v20, 0.0  ;;  %v525_v14 = vmul.f32 0.01, %v397_v20 }
  0x4f   : > { %651 = vst [vmem:[%s959_s26 + $0x158] sm:$0xff] %v587_v4  ;;  %vm462_vm14 = vcmp.ge.f32.partialorder %v398_v45, 0.0  ;;  %652 = vst [vmem:[%s959_s26 + $0x160] sm:$0xff] %v588_v7  ;;  %v526_v8 = vmul.f32 0.01, %v398_v45  ;;  %v399_v21 = vadd.f32 %v878_v1, %v328_v28  ;;  %v400_v22 = vadd.f32 %v878_v1, %v329_v29 }
  0x50   : > { %v330_v47 = vmul.f32 %v866_v0, %v1049_v50  ;;  %v589_v34 = vsel %vm461_vm13, %v397_v20, %v525_v14  ;;  %v331_v49 = vmul.f32 %v866_v0, %v1052_v52  ;;  %v332_v37 = vmul.f32 %v866_v0, %v1334_v30 }
  0x51   : > { %v333_v32 = vmul.f32 %v866_v0, %v1335_v31  ;;  %653 = vst [vmem:[%s959_s26 + $0x168] sm:$0xff] %v589_v34  ;;  %v590_v40 = vsel %vm462_vm14, %v398_v45, %v526_v8  ;;  %vm463_vm15 = vcmp.ge.f32.partialorder %v399_v21, 0.0  ;;  %v527_v44 = vmul.f32 0.01, %v399_v21 }
  0x52   : > { %vm464_vm0 = vcmp.ge.f32.partialorder %v400_v22, 0.0  ;;  %654 = vst [vmem:[%s959_s26 + $0x170] sm:$0xff] %v590_v40  ;;  %v528_v48 = vmul.f32 0.01, %v400_v22  ;;  %v401_v50 = vadd.f32 %v878_v1, %v330_v47  ;;  %v402_v51 = vadd.f32 %v878_v1, %v331_v49 }
  0x53   : > { %v403_v52 = vadd.f32 %v878_v1, %v332_v37  ;;  %v591_v54 = vsel %vm463_vm15, %v399_v21, %v527_v44  ;;  %v404_v33 = vadd.f32 %v878_v1, %v333_v32  ;;  %v334_v35 = vmul.f32 %v866_v0, %v1336_v58 }
  0x54   : > { %v335_v36 = vmul.f32 %v866_v0, %v1337_v62  ;;  %655 = vst [vmem:[%s959_s26 + $0x178] sm:$0xff] %v591_v54  ;;  %v592_v5 = vsel %vm464_vm0, %v400_v22, %v528_v48  ;;  %vm465_vm1 = vcmp.ge.f32.partialorder %v401_v50, 0.0  ;;  %v529_v9 = vmul.f32 0.01, %v401_v50 }
  0x55   : > { %vm466_vm2 = vcmp.ge.f32.partialorder %v402_v51, 0.0  ;;  %656 = vst [vmem:[%s959_s26 + $0x180] sm:$0xff] %v592_v5  ;;  %v530_v10 = vmul.f32 0.01, %v402_v51  ;;  %vm467_vm3 = vcmp.ge.f32.partialorder %v403_v52, 0.0  ;;  %vm468_vm4 = vcmp.ge.f32.partialorder %v404_v33, 0.0 }
  0x56   : > { %v531_v23 = vmul.f32 0.01, %v403_v52  ;;  %v593_v13 = vsel %vm465_vm1, %v401_v50, %v529_v9  ;;  %v532_v24 = vmul.f32 0.01, %v404_v33  ;;  %v405_v15 = vadd.f32 %v878_v1, %v334_v35 }
  0x57   : > { %v406_v38 = vadd.f32 %v878_v1, %v335_v36  ;;  %657 = vst [vmem:[%s959_s26 + $0x188] sm:$0xff] %v593_v13  ;;  %v594_v53 = vsel %vm466_vm2, %v402_v51, %v530_v10  ;;  %v336_v61 = vmul.f32 %v866_v0, %v1338_v56  ;;  %v337_v63 = vmul.f32 %v866_v0, %v1070_v60 }
  0x58   : > { %v595_v25 = vsel %vm467_vm3, %v403_v52, %v531_v23  ;;  %658 = vst [vmem:[%s959_s26 + $0x190] sm:$0xff] %v594_v53  ;;  %v596_v16 = vsel %vm468_vm4, %v404_v33, %v532_v24  ;;  %vm469_vm5 = vcmp.ge.f32.partialorder %v405_v15, 0.0  ;;  %v533_v26 = vmul.f32 0.01, %v405_v15 }
  0x59   : > { %659 = vst [vmem:[%s959_s26 + $0x198] sm:$0xff] %v595_v25  ;;  %vm470_vm6 = vcmp.ge.f32.partialorder %v406_v38, 0.0  ;;  %660 = vst [vmem:[%s959_s26 + $0x1a0] sm:$0xff] %v596_v16  ;;  %v534_v39 = vmul.f32 0.01, %v406_v38  ;;  %v407_v41 = vadd.f32 %v878_v1, %v336_v61  ;;  %v408_v6 = vadd.f32 %v878_v1, %v337_v63 }
  0x5a   : > { %v338_v27 = vmul.f32 %v866_v0, %v1339_v42  ;;  %v597_v43 = vsel %vm469_vm5, %v405_v15, %v533_v26  ;;  %v339_v60 = vmul.f32 %v866_v0, %v1080_v55  ;;  %v340_v17 = vmul.f32 %v866_v0, %v1083_v57 }
  0x5b   : > { %v341_v2 = vmul.f32 %v866_v0, %v1340_v18  ;;  %661 = vst [vmem:[%s959_s26 + $0x1a8] sm:$0xff] %v597_v43  ;;  %v598_v3 = vsel %vm470_vm6, %v406_v38, %v534_v39  ;;  %vm471_vm7 = vcmp.ge.f32.partialorder %v407_v41, 0.0  ;;  %v535_v19 = vmul.f32 0.01, %v407_v41 }
  0x5c   : > { %vm472_vm8 = vcmp.ge.f32.partialorder %v408_v6, 0.0  ;;  %662 = vst [vmem:[%s959_s26 + $0x1b0] sm:$0xff] %v598_v3  ;;  %v536_v20 = vmul.f32 0.01, %v408_v6  ;;  %v409_v45 = vadd.f32 %v878_v1, %v338_v27  ;;  %v410_v46 = vadd.f32 %v878_v1, %v339_v60 }
  0x5d   : > { %v411_v55 = vadd.f32 %v878_v1, %v340_v17  ;;  %v599_v4 = vsel %vm471_vm7, %v407_v41, %v535_v19  ;;  %v412_v57 = vadd.f32 %v878_v1, %v341_v2  ;;  %v342_v28 = vmul.f32 %v866_v0, %v1093_v11 }
  0x5e   : > { %v343_v29 = vmul.f32 %v866_v0, %v1096_v12  ;;  %663 = vst [vmem:[%s959_s26 + $0x1b8] sm:$0xff] %v599_v4  ;;  %v600_v7 = vsel %vm472_vm8, %v408_v6, %v536_v20  ;;  %vm473_vm9 = vcmp.ge.f32.partialorder %v409_v45, 0.0  ;;  %v537_v14 = vmul.f32 0.01, %v409_v45 }
  0x5f   : > { %vm474_vm10 = vcmp.ge.f32.partialorder %v410_v46, 0.0  ;;  %664 = vst [vmem:[%s959_s26 + $0x1c0] sm:$0xff] %v600_v7  ;;  %v538_v8 = vmul.f32 0.01, %v410_v46  ;;  %vm475_vm11 = vcmp.ge.f32.partialorder %v411_v55, 0.0  ;;  %vm476_vm12 = vcmp.ge.f32.partialorder %v412_v57, 0.0 }
  0x60   : > { %v539_v21 = vmul.f32 0.01, %v411_v55  ;;  %v601_v22 = vsel %vm473_vm9, %v409_v45, %v537_v14  ;;  %v540_v47 = vmul.f32 0.01, %v412_v57  ;;  %v413_v11 = vadd.f32 %v878_v1, %v342_v28 }
  0x61   : > { %v414_v12 = vadd.f32 %v878_v1, %v343_v29  ;;  %665 = vst [vmem:[%s959_s26 + $0x1c8] sm:$0xff] %v601_v22  ;;  %v602_v34 = vsel %vm474_vm10, %v410_v46, %v538_v8  ;;  %v344_v30 = vmul.f32 %v866_v0, %v1099_v59 }
  0x62   : > { %v603_v49 = vsel %vm475_vm11, %v411_v55, %v539_v21  ;;  %666 = vst [vmem:[%s959_s26 + $0x1d0] sm:$0xff] %v602_v34  ;;  %v604_v37 = vsel %vm476_vm12, %v412_v57, %v540_v47  ;;  %vm477_vm13 = vcmp.ge.f32.partialorder %v413_v11, 0.0  ;;  %v541_v31 = vmul.f32 0.01, %v413_v11 }
  0x63   : > { %667 = vst [vmem:[%s959_s26 + $0x1d8] sm:$0xff] %v603_v49  ;;  %vm478_vm14 = vcmp.ge.f32.partialorder %v414_v12, 0.0  ;;  %668 = vst [vmem:[%s959_s26 + $0x1e0] sm:$0xff] %v604_v37  ;;  %v542_v32 = vmul.f32 0.01, %v414_v12  ;;  %v415_v40 = vadd.f32 %v878_v1, %v344_v30 }
  0x64   : > { %v605_v44 = vsel %vm477_vm13, %v413_v11, %v541_v31 }
  0x65   : > { %669 = vst [vmem:[%s959_s26 + $0x1e8] sm:$0xff] %v605_v44  ;;  %v606_v48 = vsel %vm478_vm14, %v414_v12, %v542_v32  ;;  %vm479_vm15 = vcmp.ge.f32.partialorder %v415_v40, 0.0  ;;  %v543_v50 = vmul.f32 0.01, %v415_v40 }
  0x66   : > { %670 = vst [vmem:[%s959_s26 + $0x1f0] sm:$0xff] %v606_v48 }
  0x67   : > { %v607_v51 = vsel %vm479_vm15, %v415_v40, %v543_v50 }
  0x68   : > { %671 = vst [vmem:[%s959_s26 + $0x1f8] sm:$0xff] %v607_v51 }
  0x69 PF: > { %s13_s14 = sadd.s32 1, %s820_s14   ;;  %s1341_s12 = smov %s816_s13 }
  0x6a   : > { %p10_p5 = scmp.ge.s32.totalorder %s13_s14, 4   ;;  %s1342_s13 = smov %s1344_s15 }
  0x6c   :  { %12 = sbr.rel (!%p10_p5) target bundleno = 2 (0x2), region = 62 }

// kernel: cbr_conv3d_forward.2
= control target key start
LH: loop header
LB: loop body
LE: loop exit
PB: predicated region body
PF: predicated region fallthrough
CT: control target
= control target key end

     0   :  { %s5897_s21 = smov 0   ;;  %s5899_s22 = smov 0   ;;  %s6726_s0 = inlined_call_operand.vmem [shape: f32[2,10,10,10,8], index: 0, kind: input, shape index: {}, may-alias: {0,1,2}]   ;;  %s6727_s1 = inlined_call_operand.vmem [shape: f32[2,10,10,10,8], index: 1, kind: input, shape index: {}, may-alias: {0,1,2}]   ;;  %s6728_s2 = inlined_call_operand.vmem [shape: f32[2,10,10,10,8], index: 2, kind: input, shape index: {}, may-alias: {0,1,2}]   ;;  %s6729_s3 = inlined_call_operand.vmem [shape: f32[216,128], index: 3, kind: input, shape index: {}]   ;;  %s6730_s4 = inlined_call_operand.vmem [shape: f32[1,128], index: 4, kind: input, shape index: {}]   ;;  %s6731_s5 = inlined_call_operand.vmem [shape: f32[2,512,128], index: 5, kind: output, shape index: {0}]   ;;  %s6732_s6 = inlined_call_operand.vmem [shape: f32[2,8,8,128], index: 6, kind: output, shape index: {1}]  }
   0x1   :  { %s5901_s23 = smov 0   ;;  %s5903_s24 = smov 0  }
   0x2   :  { %s5905_s25 = smov 0  }
   0x3 LB: > { %s26_s26 = sadd.s32 1, %s5852_s23  ;;  %s29_s27 = sadd.s32 1, %s5856_s24  ;;  %s5860_s25 = sphi %s5905_s25, %s17_s25   ;;  %s5856_s24 = sphi %s5903_s24, %s6736_s24   ;;  %s5852_s23 = sphi %s5901_s23, %s6735_s23   ;;  %s5848_s22 = sphi %s5899_s22, %s6734_s22   ;;  %s5844_s21 = sphi %s5897_s21, %s6733_s21  }
   0x4   : > { %p27_p0 = scmp.ge.s32.totalorder %s26_s26, 8  ;;  %p4575_p1 = scmp.ge.s32.totalorder %s5860_s25, 1 }
   0x5   : > { %p277_p2 = scmp.lt.s32.totalorder %s5860_s25, 17 }
   0x6   : > { %s6738_s26 = smov (%p27_p0, %s26_s26), 0  ;;  %s6740_s27 = smov (!%p27_p0, %s29_s27), %s5856_s24 }
   0x7   : > { %p278_p3 = pnand %p4575_p1, %p277_p2  ;;  %p31_p4 = scmp.ge.s32.totalorder %s6740_s27, 2 }
   0x8   : > { %v409_v0 = vld [vmem:[%s6729_s3 + $0x8] sm:$0xff] (!%p278_p3)  ;;  %p343_p5 = scmp.lt.s32.totalorder (!%p278_p3), %s5848_s22, 1  ;;  %p345_p6 = scmp.lt.s32.totalorder (!%p278_p3), %s5844_s21, 9  ;;  %v400_v2 = vld [vmem:[%s6729_s3] sm:$0xff] (!%p278_p3)  ;;  %v2432_v3 = vld [vmem:[%s6729_s3 + $0x70] sm:$0xff] (!%p278_p3)  ;;  %vm410_vm0 = vcmask (!%p278_p3), 64512  }
   0x9   : > { %s6742_s27 = smov (%p31_p4, %s6740_s27), 0  ;;  %281 = sbr.rel (%p278_p3) target bundleno = 478 (0x1de), region = 40 }
   0xa   : > { %v5935_v1 = vld [vmem:[%s6729_s3 + $0x68] sm:$0xff] (!%p278_p3)  ;;  %5190 = vmatprep.subr.mxu1 (!%p278_p3), %v409_v0  ;;  %s352_s10 = sadd.s32 (!%p278_p3), 1, %s5844_s21  ;;  %v677_v7 = vld [vmem:[%s6729_s3 + $0x10] sm:$0xff] (!%p278_p3)  ;;  %v2579_v13 = vld [vmem:[%s6729_s3 + $0x78] sm:$0xff] (!%p278_p3)  ;;  %s363_s9 = sadd.s32 (!%p278_p3), 2, %s5844_s21 }
   0xb   : > { %5372 = vmatprep.subr.mxu0 (!%p278_p3), %v5935_v1  ;;  %5191 = vmatpush3.msra.mxu1 (!%p278_p3), %v409_v0  ;;  %p355_p7 = scmp.lt.s32.totalorder (!%p278_p3), %s352_s10, 9  ;;  %v2725_v22 = vld [vmem:[%s6729_s3 + $0x80] sm:$0xff] (!%p278_p3)  ;;  %v824_v27 = vld [vmem:[%s6729_s3 + $0x18] sm:$0xff] (!%p278_p3)  ;;  %v2871_v40 = vld [vmem:[%s6729_s3 + $0x88] sm:$0xff] (!%p278_p3)  ;;  %p366_p8 = scmp.lt.s32.totalorder (!%p278_p3), %s363_s9, 9 }
   0xc   : > { %5373 = vmatpush3.msra.mxu0 (!%p278_p3), %v5935_v1  ;;  %5204 = vmatprep.subr.mxu1 (!%p278_p3), %v400_v2  ;;  %v970_v45 = vld [vmem:[%s6729_s3 + $0x20] sm:$0xff] (!%p278_p3)  ;;  %v3017_v54 = vld [vmem:[%s6729_s3 + $0x90] sm:$0xff] (!%p278_p3)  ;;  %v1116_v57 = vld [vmem:[%s6729_s3 + $0x28] sm:$0xff] (!%p278_p3)  ;;  %p386_p10 = scmp.lt.s32.totalorder (!%p278_p3), %s5844_s21, 7 }
   0xd   : > { %5386 = vmatprep.subr.mxu0 (!%p278_p3), %v2432_v3  ;;  %v3163_v62 = vld [vmem:[%s6729_s3 + $0x98] sm:$0xff] (!%p278_p3)  ;;  %v1263_v63 = vld [vmem:[%s6729_s3 + $0x30] sm:$0xff] (!%p278_p3) }
  0x10   : > { %s6744_s22 = smov (!%p343_p5, %s5848_s22), 1  ;;  %s6746_s10 = smov (!%p355_p7, %s352_s10), 9 }
  0x11   : > { %s346_s13 = scalar_select %p345_p6, %s5844_s21, 9 }
  0x12   : > { %s5951_s14 = smul.u32 200, %s6744_s22  ;;  %s6748_s9 = smov (!%p366_p8, %s363_s9), 9 }
  0x13   : > { %s5778_s15 = smul.u32 20, %s346_s13  ;;  %s4580_s20 = sshll.u32 %s6744_s22, 6 }
  0x14   : > { %s5780_s18 = smul.u32 20, %s6746_s10 }
  0x15   : > { %s349_s16 = sadd.s32 %s5951_s14, %s5778_s15  ;;  %s5781_s13 = smul.u32 20, %s6748_s9 }
  0x16   : > { %s4576_s17 = sshll.u32 %s349_s16, 3  ;;  %s359_s29 = sadd.s32 %s5780_s18, %s5951_s14 }
  0x17   : > { %s5957_s28 = scalar_lea.vmem %s6726_s0, %s4576_s17  ;;  %s4577_s30 = sshll.u32 %s359_s29, 3 }
  0x18   : > { %v401_v4 = vld [vmem:[%s5957_s28 + $0x1] sm:$0xff]  ;;  %v5961_v5 = vld [vmem:[%s5957_s28 + $0x11] sm:$0xff]  ;;  %s5976_s11 = scalar_lea.vmem %s6727_s1, %s4577_s30  ;;  %s370_s17 = sadd.s32 %s5781_s13, %s5951_s14 }
  0x19   : > { %v5965_v6 = vld [vmem:[%s5957_s28 + $0x21] sm:$0xff]  ;;  %5192 = vmatprep.mubr.msk.f32.mxu1 %vm410_vm0, %v401_v4  ;;  %v5979_v8 = vld [vmem:[%s5976_s11 + $0x11] sm:$0xff]  ;;  %s4578_s18 = sshll.u32 %s370_s17, 3 }
  0x1a   : > { %5193 = vmatmul.mubr.msk.f32.vlgmr.msra.gmra.mrb[0].mxu1 %vm410_vm0, %v5961_v5  ;;  %v5982_v9 = vld [vmem:[%s5976_s11 + $0x21] sm:$0xff]  ;;  %v5987_v10 = vld [vmem:[%s5957_s28 + $0x31] sm:$0xff]  ;;  %5374 = vmatprep.mubr.msk.f32.mxu0 %vm410_vm0, %v5979_v8  ;;  %s6271_s30 = scalar_lea.vmem %s6728_s2, %s4578_s18 }
  0x1b   : > { %5205 = vmatpush3.msra.mxu1 %v400_v2  ;;  %5195 = vmatprep.mubr.msk.f32.mxu1 %vm410_vm0, %v5965_v6  ;;  %v5992_v11 = vld [vmem:[%s5976_s11 + $0x31] sm:$0xff]  ;;  %v5995_v12 = vld [vmem:[%s5957_s28 + $0x41] sm:$0xff] }
  0x1c   : > { %5218 = vmatprep.subr.mxu1 %v677_v7  ;;  %5375 = vmatmul.mubr.msk.f32.vlgmr.msra.gmra.mrb[0].mxu0 %vm410_vm0, %v5982_v9  ;;  %v6005_v14 = vld [vmem:[%s5976_s11 + $0x41] sm:$0xff]  ;;  %v6012_v15 = vld [vmem:[%s5957_s28 + $0x51] sm:$0xff] }
  0x1d   : > { %5387 = vmatpush3.msra.mxu0 %v2432_v3  ;;  %5377 = vmatprep.mubr.msk.f32.mxu0 %vm410_vm0, %v5992_v11  ;;  %v6015_v16 = vld [vmem:[%s5976_s11 + $0x12] sm:$0xff]  ;;  %v6018_v17 = vld [vmem:[%s5957_s28 + $0x61] sm:$0xff] }
  0x1e   : > { %5196 = vmatmul.mubr.msk.f32.gmra.mrb[2].mxu1 %vm410_vm0, %v5987_v10  ;;  %5400 = vmatprep.subr.mxu0 %v2579_v13  ;;  %v6027_v18 = vld [vmem:[%s5976_s11 + $0x22] sm:$0xff]  ;;  %v6032_v19 = vld [vmem:[%s5957_s28 + $0x71] sm:$0xff] }
  0x1f   : > { %5198 = vmatprep.mubr.msk.f32.mxu1 %vm410_vm0, %v5995_v12  ;;  %v6035_v20 = vld [vmem:[%s5976_s11 + $0x32] sm:$0xff]  ;;  %v392_v21 = vld [vmem:[%s5957_s28] sm:$0xff] }
  0x20   : > { %5378 = vmatmul.mubr.msk.f32.gmra.mrb[2].mxu0 %vm410_vm0, %v6005_v14  ;;  %v6046_v23 = vld [vmem:[%s5976_s11 + $0x42] sm:$0xff]  ;;  %v6052_v24 = vld [vmem:[%s5957_s28 + $0x10] sm:$0xff] }
  0x21   : > { %5388 = vmatprep.mubr.msk.f32.mxu0 %vm410_vm0, %v6015_v16  ;;  %v6055_v25 = vld [vmem:[%s5976_s11 + $0x52] sm:$0xff]  ;;  %v6058_v26 = vld [vmem:[%s5957_s28 + $0x20] sm:$0xff] }
  0x22   : > { %5199 = vmatmul.mubr.msk.f32.gmra.mrb[4].mxu1 %vm410_vm0, %v6012_v15  ;;  %v6070_v28 = vld [vmem:[%s5976_s11 + $0x62] sm:$0xff]  ;;  %v6075_v29 = vld [vmem:[%s5957_s28 + $0x30] sm:$0xff] }
  0x23   : > { %5201 = vmatprep.mubr.msk.f32.mxu1 %vm410_vm0, %v6018_v17  ;;  %v6078_v30 = vld [vmem:[%s5976_s11 + $0x72] sm:$0xff]  ;;  %v6081_v31 = vld [vmem:[%s5957_s28 + $0x40] sm:$0xff] }
  0x24   : > { %5389 = vmatmul.mubr.msk.f32.vlgmr.msra.gmra.mrb[0].mxu0 %vm410_vm0, %v6027_v18  ;;  %v6090_v32 = vld [vmem:[%s5976_s11 + $0x82] sm:$0xff]  ;;  %v6095_v33 = vld [vmem:[%s5957_s28 + $0x50] sm:$0xff] }
  0x25   : > { %5401 = vmatpush3.msra.mxu0 %v2579_v13  ;;  %5391 = vmatprep.mubr.msk.f32.mxu0 %vm410_vm0, %v6035_v20  ;;  %v6098_v34 = vld [vmem:[%s5976_s11 + $0x20] sm:$0xff]  ;;  %v6110_v36 = vld [vmem:[%s5976_s11 + $0x30] sm:$0xff] }
  0x26   : > { %5202 = vmatmul.mubr.msk.f32.gmra.mrb[6].mxu1 %vm410_vm0, %v6032_v19  ;;  %5414 = vmatprep.subr.mxu0 %v2725_v22  ;;  %v6101_v35 = vld [vmem:[%s5957_s28 + $0x60] sm:$0xff]  ;;  %v6115_v37 = vld [vmem:[%s5957_s28 + $0x70] sm:$0xff] }
  0x27   : > { %5206 = vmatprep.mubr.msk.f32.mxu1 %vm410_vm0, %v392_v21  ;;  %v6118_v38 = vld [vmem:[%s5976_s11 + $0x40] sm:$0xff]  ;;  %v6129_v41 = vld [vmem:[%s5976_s11 + $0x50] sm:$0xff] }
  0x28   : > { %5392 = vmatmul.mubr.msk.f32.gmra.mrb[2].mxu0 %vm410_vm0, %v6046_v23  ;;  %v669_v39 = vld [vmem:[%s5957_s28 + $0x2] sm:$0xff]  ;;  %v6135_v42 = vld [vmem:[%s5957_s28 + $0x12] sm:$0xff] }
  0x29   : > { %5394 = vmatprep.mubr.msk.f32.mxu0 %vm410_vm0, %v6055_v25  ;;  %v6138_v43 = vld [vmem:[%s5976_s11 + $0x60] sm:$0xff]  ;;  %v6153_v46 = vld [vmem:[%s5976_s11 + $0x70] sm:$0xff] }
  0x2a   : > { %5207 = vmatmul.mubr.msk.f32.vlgmr.msra.gmra.mrb[0].mxu1 %vm410_vm0, %v6052_v24  ;;  %v6141_v44 = vld [vmem:[%s5957_s28 + $0x22] sm:$0xff]  ;;  %v6158_v47 = vld [vmem:[%s5957_s28 + $0x32] sm:$0xff] }
  0x2b   : > { %5219 = vmatpush3.msra.mxu1 %v677_v7  ;;  %5209 = vmatprep.mubr.msk.f32.mxu1 %vm410_vm0, %v6058_v26  ;;  %v6161_v48 = vld [vmem:[%s5976_s11 + $0x80] sm:$0xff]  ;;  %v4783_v50 = vld [vmem:[%s5976_s11 + $0x90] sm:$0xff] }
  0x2c   : > { %5232 = vmatprep.subr.mxu1 %v824_v27  ;;  %5395 = vmatmul.mubr.msk.f32.gmra.mrb[4].mxu0 %vm410_vm0, %v6070_v28  ;;  %v6164_v49 = vld [vmem:[%s5957_s28 + $0x42] sm:$0xff]  ;;  %v6176_v51 = vld [vmem:[%s5957_s28 + $0x52] sm:$0xff] }
  0x2d   : > { %5397 = vmatprep.mubr.msk.f32.mxu0 %vm410_vm0, %v6078_v30  ;;  %v6179_v52 = vld [vmem:[%s5957_s28 + $0x62] sm:$0xff]  ;;  %v6189_v53 = vld [vmem:[%s5957_s28 + $0x72] sm:$0xff] }
  0x2e   : > { %5210 = vmatmul.mubr.msk.f32.gmra.mrb[2].mxu1 %vm410_vm0, %v6075_v29  ;;  %v6199_v55 = vld [vmem:[%s5976_s11 + $0x51] sm:$0xff]  ;;  %v6206_v56 = vld [vmem:[%s5976_s11 + $0x61] sm:$0xff] }
  0x2f   : > { %5212 = vmatprep.mubr.msk.f32.mxu1 %vm410_vm0, %v6081_v31  ;;  %v6219_v58 = vld [vmem:[%s5976_s11 + $0x71] sm:$0xff]  ;;  %v6224_v59 = vld [vmem:[%s5976_s11 + $0x81] sm:$0xff] }
  0x30   : > { %5398 = vmatmul.mubr.msk.f32.gmra.mrb[6].mxu0 %vm410_vm0, %v6090_v32  ;;  %v4799_v60 = vld [vmem:[%s5976_s11 + $0x91] sm:$0xff]  ;;  %v6243_v61 = vld [vmem:[%s5957_s28 + $0x80] sm:$0xff] }
  0x31   : > { %5402 = vmatprep.mubr.msk.f32.mxu0 %vm410_vm0, %v6098_v34  ;;  %v4815_v0 = vld [vmem:[%s5976_s11 + $0x92] sm:$0xff]  ;;  %v3009_v2 = vld [vmem:[%s6271_s30] sm:$0xff] }
  0x32   : > { %5213 = vmatmul.mubr.msk.f32.gmra.mrb[4].mxu1 %vm410_vm0, %v6095_v33  ;;  %v6288_v3 = vld [vmem:[%s6271_s30 + $0x10] sm:$0xff]  ;;  %v6293_v4 = vld [vmem:[%s5957_s28 + $0x81] sm:$0xff] }
  0x33   : > { %5215 = vmatprep.mubr.msk.f32.mxu1 %vm410_vm0, %v6101_v35  ;;  %v3309_v7 = vld [vmem:[%s6729_s3 + $0xa0] sm:$0xff]  ;;  %v6306_v13 = vld [vmem:[%s6271_s30 + $0x30] sm:$0xff] }
  0x34   : > { %5403 = vmatmul.mubr.msk.f32.vlgmr.msra.gmra.mrb[0].mxu0 %vm410_vm0, %v6110_v36  ;;  %v6313_v21 = vld [vmem:[%s6271_s30 + $0x40] sm:$0xff] }
  0x35   : > { %5415 = vmatpush3.msra.mxu0 %v2725_v22  ;;  %5405 = vmatprep.mubr.msk.f32.mxu0 %vm410_vm0, %v6118_v38  ;;  %v1409_v22 = vld [vmem:[%s6729_s3 + $0x38] sm:$0xff] }
  0x36   : > { %5216 = vmatmul.mubr.msk.f32.gmra.mrb[6].mxu1 %vm410_vm0, %v6115_v37  ;;  %5428 = vmatprep.subr.mxu0 %v2871_v40 }
  0x37   : > { %5220 = vmatprep.mubr.msk.f32.mxu1 %vm410_vm0, %v669_v39  ;;  %v3155_v39 = vld [vmem:[%s6271_s30 + $0x1] sm:$0xff] }
  0x38   : > { %5406 = vmatmul.mubr.msk.f32.gmra.mrb[2].mxu0 %vm410_vm0, %v6129_v41 }
  0x39   : > { %5408 = vmatprep.mubr.msk.f32.mxu0 %vm410_vm0, %v6138_v43 }
  0x3a   : > { %5221 = vmatmul.mubr.msk.f32.vlgmr.msra.gmra.mrb[0].mxu1 %vm410_vm0, %v6135_v42 }
  0x3b   : > { %5233 = vmatpush3.msra.mxu1 %v824_v27  ;;  %5223 = vmatprep.mubr.msk.f32.mxu1 %vm410_vm0, %v6141_v44  ;;  %v6330_v27 = vld [vmem:[%s6271_s30 + $0x60] sm:$0xff] }
  0x3c   : > { %5246 = vmatprep.subr.mxu1 %v970_v45  ;;  %5409 = vmatmul.mubr.msk.f32.gmra.mrb[4].mxu0 %vm410_vm0, %v6153_v46 }
  0x3d   : > { %5411 = vmatprep.mubr.msk.f32.mxu0 %vm410_vm0, %v6161_v48 }
  0x3e   : > { %5224 = vmatmul.mubr.msk.f32.gmra.mrb[2].mxu1 %vm410_vm0, %v6158_v47 }
  0x3f   : > { %5226 = vmatprep.mubr.msk.f32.mxu1 %vm410_vm0, %v6164_v49 }
  0x40   : > { %5412 = vmatmul.mubr.msk.f32.gmra.mrb[6].mxu0 %vm410_vm0, %v4783_v50  ;;  %v3456_v50 = vld [vmem:[%s6729_s3 + $0xa8] sm:$0xff] }
  0x41   : > { %5416 = vmatprep.mubr.msk.f32.mxu0 %vm410_vm0, %v5982_v9 }
  0x42   : > { %5227 = vmatmul.mubr.msk.f32.gmra.mrb[4].mxu1 %vm410_vm0, %v6176_v51 }
  0x43   : > { %5229 = vmatprep.mubr.msk.f32.mxu1 %vm410_vm0, %v6179_v52 }
  0x44   : > { %5417 = vmatmul.mubr.msk.f32.vlgmr.msra.gmra.mrb[0].mxu0 %vm410_vm0, %v5992_v11 }
  0x45   : > { %5429 = vmatpush3.msra.mxu0 %v2871_v40  ;;  %5419 = vmatprep.mubr.msk.f32.mxu0 %vm410_vm0, %v6005_v14  ;;  %v6350_v40 = vld [vmem:[%s6271_s30 + $0x11] sm:$0xff] }
  0x46   : > { %5230 = vmatmul.mubr.msk.f32.gmra.mrb[6].mxu1 %vm410_vm0, %v6189_v53  ;;  %5442 = vmatprep.subr.mxu0 %v3017_v54 }
  0x47   : > { %5234 = vmatprep.mubr.msk.f32.mxu1 %vm410_vm0, %v6052_v24  ;;  %v6325_v24 = vld [vmem:[%s6271_s30 + $0x50] sm:$0xff] }
  0x48   : > { %5420 = vmatmul.mubr.msk.f32.gmra.mrb[2].mxu0 %vm410_vm0, %v6199_v55 }
  0x49   : > { %5422 = vmatprep.mubr.msk.f32.mxu0 %vm410_vm0, %v6206_v56 }
  0x4a   : > { %5235 = vmatmul.mubr.msk.f32.vlgmr.msra.gmra.mrb[0].mxu1 %vm410_vm0, %v6058_v26 }
  0x4b   : > { %5247 = vmatpush3.msra.mxu1 %v970_v45  ;;  %5237 = vmatprep.mubr.msk.f32.mxu1 %vm410_vm0, %v6075_v29  ;;  %v6358_v45 = vld [vmem:[%s6271_s30 + $0x21] sm:$0xff] }
  0x4c   : > { %5260 = vmatprep.subr.mxu1 %v1116_v57  ;;  %5423 = vmatmul.mubr.msk.f32.gmra.mrb[4].mxu0 %vm410_vm0, %v6219_v58 }
  0x4d   : > { %5425 = vmatprep.mubr.msk.f32.mxu0 %vm410_vm0, %v6224_v59 }
  0x4e   : > { %5238 = vmatmul.mubr.msk.f32.gmra.mrb[2].mxu1 %vm410_vm0, %v6081_v31 }
  0x4f   : > { %5240 = vmatprep.mubr.msk.f32.mxu1 %vm410_vm0, %v6095_v33 }
  0x50   : > { %5426 = vmatmul.mubr.msk.f32.gmra.mrb[6].mxu0 %vm410_vm0, %v4799_v60  ;;  %v1555_v60 = vld [vmem:[%s6729_s3 + $0x40] sm:$0xff] }
  0x51   : > { %5430 = vmatprep.mubr.msk.f32.mxu0 %vm410_vm0, %v6027_v18 }
  0x52   : > { %5241 = vmatmul.mubr.msk.f32.gmra.mrb[4].mxu1 %vm410_vm0, %v6101_v35 }
  0x53   : > { %5243 = vmatprep.mubr.msk.f32.mxu1 %vm410_vm0, %v6115_v37 }
  0x54   : > { %5431 = vmatmul.mubr.msk.f32.vlgmr.msra.gmra.mrb[0].mxu0 %vm410_vm0, %v6035_v20 }
  0x55   : > { %5443 = vmatpush3.msra.mxu0 %v3017_v54  ;;  %5433 = vmatprep.mubr.msk.f32.mxu0 %vm410_vm0, %v6046_v23  ;;  %v6368_v54 = vld [vmem:[%s6271_s30 + $0x31] sm:$0xff] }
  0x56   : > { %5244 = vmatmul.mubr.msk.f32.gmra.mrb[6].mxu1 %vm410_vm0, %v6243_v61  ;;  %5456 = vmatprep.subr.mxu0 %v3163_v62 }
  0x57   : > { %5248 = vmatprep.mubr.msk.f32.mxu1 %vm410_vm0, %v5961_v5  ;;  %v6296_v5 = vld [vmem:[%s6271_s30 + $0x20] sm:$0xff] }
  0x58   : > { %5434 = vmatmul.mubr.msk.f32.gmra.mrb[2].mxu0 %vm410_vm0, %v6055_v25 }
  0x59   : > { %5436 = vmatprep.mubr.msk.f32.mxu0 %vm410_vm0, %v6070_v28 }
  0x5a   : > { %5249 = vmatmul.mubr.msk.f32.vlgmr.msra.gmra.mrb[0].mxu1 %vm410_vm0, %v5965_v6 }
  0x5b   : > { %5261 = vmatpush3.msra.mxu1 %v1116_v57  ;;  %5251 = vmatprep.mubr.msk.f32.mxu1 %vm410_vm0, %v5987_v10  ;;  %v6375_v57 = vld [vmem:[%s6271_s30 + $0x41] sm:$0xff] }
  0x5c   : > { %5274 = vmatprep.subr.mxu1 %v1263_v63  ;;  %5437 = vmatmul.mubr.msk.f32.gmra.mrb[4].mxu0 %vm410_vm0, %v6078_v30 }
  0x5d   : > { %5439 = vmatprep.mubr.msk.f32.mxu0 %vm410_vm0, %v6090_v32  ;;  %v6339_v32 = vld [vmem:[%s6271_s30 + $0x70] sm:$0xff] }
  0x5e   : > { %5252 = vmatmul.mubr.msk.f32.gmra.mrb[2].mxu1 %vm410_vm0, %v5995_v12 }
  0x5f   : > { %5254 = vmatprep.mubr.msk.f32.mxu1 %vm410_vm0, %v6012_v15 }
  0x60   : > { %5440 = vmatmul.mubr.msk.f32.gmra.mrb[6].mxu0 %vm410_vm0, %v4815_v0  ;;  %v6418_v0 = vld [vmem:[%s6271_s30 + $0x22] sm:$0xff] }
  0x61   : > { %5444 = vmatprep.mubr.msk.f32.mxu0 %vm410_vm0, %v3009_v2  ;;  %v1701_v2 = vld [vmem:[%s6729_s3 + $0x48] sm:$0xff] }
  0x62   : > { %5255 = vmatmul.mubr.msk.f32.gmra.mrb[4].mxu1 %vm410_vm0, %v6018_v17 }
  0x63   : > { %5257 = vmatprep.mubr.msk.f32.mxu1 %vm410_vm0, %v6032_v19 }
  0x64   : > { %5445 = vmatmul.mubr.msk.f32.vlgmr.msra.gmra.mrb[0].mxu0 %vm410_vm0, %v6288_v3 }
  0x65   : > { %5457 = vmatpush3.msra.mxu0 %v3163_v62  ;;  %5447 = vmatprep.mubr.msk.f32.mxu0 %vm410_vm0, %v6296_v5  ;;  %v6387_v62 = vld [vmem:[%s6271_s30 + $0x51] sm:$0xff] }
  0x66   : > { %5258 = vmatmul.mubr.msk.f32.gmra.mrb[6].mxu1 %vm410_vm0, %v6293_v4  ;;  %5470 = vmatprep.subr.mxu0 %v3309_v7 }
  0x67   : > { %5262 = vmatprep.mubr.msk.f32.mxu1 %vm410_vm0, %v6135_v42  ;;  %v6355_v42 = vld [vmem:[%s5957_s28 + $0x82] sm:$0xff] }
  0x68   : > { %5448 = vmatmul.mubr.msk.f32.gmra.mrb[2].mxu0 %vm410_vm0, %v6306_v13 }
  0x69   : > { %5450 = vmatprep.mubr.msk.f32.mxu0 %vm410_vm0, %v6313_v21 }
  0x6a   : > { %5263 = vmatmul.mubr.msk.f32.vlgmr.msra.gmra.mrb[0].mxu1 %vm410_vm0, %v6141_v44 }
  0x6b   : > { %5275 = vmatpush3.msra.mxu1 %v1263_v63  ;;  %5265 = vmatprep.mubr.msk.f32.mxu1 %vm410_vm0, %v6158_v47  ;;  %v4663_v63 = vld [vmem:[%s5957_s28 + $0x90] sm:$0xff] }
  0x6c   : > { %5288 = vmatprep.subr.mxu1 %v1409_v22  ;;  %5451 = vmatmul.mubr.msk.f32.gmra.mrb[4].mxu0 %vm410_vm0, %v6325_v24 }
  0x6d   : > { %5453 = vmatprep.mubr.msk.f32.mxu0 %vm410_vm0, %v6330_v27 }
  0x6e   : > { %5266 = vmatmul.mubr.msk.f32.gmra.mrb[2].mxu1 %vm410_vm0, %v6164_v49 }
  0x6f   : > { %5268 = vmatprep.mubr.msk.f32.mxu1 %vm410_vm0, %v6176_v51 }
  0x70   : > { %5454 = vmatmul.mubr.msk.f32.gmra.mrb[6].mxu0 %vm410_vm0, %v6339_v32 }
  0x71   : > { %5458 = vmatprep.mubr.msk.f32.mxu0 %vm410_vm0, %v3155_v39  ;;  %v4887_v39 = vld [vmem:[%s6271_s30 + $0x82] sm:$0xff] }
  0x72   : > { %5269 = vmatmul.mubr.msk.f32.gmra.mrb[4].mxu1 %vm410_vm0, %v6179_v52 }
  0x73   : > { %5271 = vmatprep.mubr.msk.f32.mxu1 %vm410_vm0, %v6189_v53 }
  0x74   : > { %5459 = vmatmul.mubr.msk.f32.vlgmr.msra.gmra.mrb[0].mxu0 %vm410_vm0, %v6350_v40 }
  0x75   : > { %5471 = vmatpush3.msra.mxu0 %v3309_v7  ;;  %5461 = vmatprep.mubr.msk.f32.mxu0 %vm410_vm0, %v6358_v45  ;;  %v6446_v7 = vld [vmem:[%s6271_s30 + $0x52] sm:$0xff] }
  0x76   : > { %5272 = vmatmul.mubr.msk.f32.gmra.mrb[6].mxu1 %vm410_vm0, %v6355_v42  ;;  %5484 = vmatprep.subr.mxu0 %v3456_v50 }
  0x77   : > { %5276 = vmatprep.mubr.msk.f32.mxu1 %vm410_vm0, %v6058_v26  ;;  %v6392_v26 = vld [vmem:[%s6271_s30 + $0x61] sm:$0xff] }
  0x78   : > { %5462 = vmatmul.mubr.msk.f32.gmra.mrb[2].mxu0 %vm410_vm0, %v6368_v54 }
  0x79   : > { %5464 = vmatprep.mubr.msk.f32.mxu0 %vm410_vm0, %v6375_v57 }
  0x7a   : > { %5277 = vmatmul.mubr.msk.f32.vlgmr.msra.gmra.mrb[0].mxu1 %vm410_vm0, %v6075_v29  ;;  %v6401_v29 = vld [vmem:[%s6271_s30 + $0x71] sm:$0xff] }
  0x7b   : > { %5289 = vmatpush3.msra.mxu1 %v1409_v22  ;;  %5279 = vmatprep.mubr.msk.f32.mxu1 %vm410_vm0, %v6081_v31  ;;  %v3301_v31 = vld [vmem:[%s6271_s30 + $0x2] sm:$0xff] }
  0x7c   : > { %5302 = vmatprep.subr.mxu1 %v1555_v60  ;;  %5465 = vmatmul.mubr.msk.f32.gmra.mrb[4].mxu0 %vm410_vm0, %v6387_v62  ;;  %v2140_v22 = vld [vmem:[%s6729_s3 + $0x60] sm:$0xff] }
  0x7d   : > { %5467 = vmatprep.mubr.msk.f32.mxu0 %vm410_vm0, %v6392_v26 }
  0x7e   : > { %5280 = vmatmul.mubr.msk.f32.gmra.mrb[2].mxu1 %vm410_vm0, %v6095_v33  ;;  %v6412_v33 = vld [vmem:[%s6271_s30 + $0x12] sm:$0xff] }
  0x7f   : > { %5282 = vmatprep.mubr.msk.f32.mxu1 %vm410_vm0, %v6101_v35  ;;  %v3602_v35 = vld [vmem:[%s6729_s3 + $0xb0] sm:$0xff] }
  0x80   : > { %5468 = vmatmul.mubr.msk.f32.gmra.mrb[6].mxu0 %vm410_vm0, %v6401_v29 }
  0x81   : > { %5472 = vmatprep.mubr.msk.f32.mxu0 %vm410_vm0, %v3301_v31 }
  0x82   : > { %5283 = vmatmul.mubr.msk.f32.gmra.mrb[4].mxu1 %vm410_vm0, %v6115_v37  ;;  %v6427_v37 = vld [vmem:[%s6271_s30 + $0x32] sm:$0xff] }
  0x83   : > { %5285 = vmatprep.mubr.msk.f32.mxu1 %vm410_vm0, %v6243_v61  ;;  %v6434_v61 = vld [vmem:[%s6271_s30 + $0x42] sm:$0xff] }
  0x84   : > { %5473 = vmatmul.mubr.msk.f32.vlgmr.msra.gmra.mrb[0].mxu0 %vm410_vm0, %v6412_v33 }
  0x85   : > { %5485 = vmatpush3.msra.mxu0 %v3456_v50  ;;  %5475 = vmatprep.mubr.msk.f32.mxu0 %vm410_vm0, %v6418_v0 }
  0x86   : > { %5286 = vmatmul.mubr.msk.f32.gmra.mrb[6].mxu1 %vm410_vm0, %v4663_v63  ;;  %5498 = vmatprep.subr.mxu0 %v3602_v35 }
  0x87   : > { %5290 = vmatprep.mubr.msk.f32.mxu1 %vm410_vm0, %v5965_v6  ;;  %v6451_v6 = vld [vmem:[%s6271_s30 + $0x62] sm:$0xff] }
  0x88   : > { %5476 = vmatmul.mubr.msk.f32.gmra.mrb[2].mxu0 %vm410_vm0, %v6427_v37 }
  0x89   : > { %5478 = vmatprep.mubr.msk.f32.mxu0 %vm410_vm0, %v6434_v61 }
  0x8a   : > { %5291 = vmatmul.mubr.msk.f32.vlgmr.msra.gmra.mrb[0].mxu1 %vm410_vm0, %v5987_v10  ;;  %v6460_v10 = vld [vmem:[%s6271_s30 + $0x72] sm:$0xff] }
  0x8b   : > { %5303 = vmatpush3.msra.mxu1 %v1555_v60  ;;  %5293 = vmatprep.mubr.msk.f32.mxu1 %vm410_vm0, %v5995_v12  ;;  %v4679_v12 = vld [vmem:[%s5957_s28 + $0x91] sm:$0xff] }
  0x8c   : > { %5316 = vmatprep.subr.mxu1 %v1701_v2  ;;  %5479 = vmatmul.mubr.msk.f32.gmra.mrb[4].mxu0 %vm410_vm0, %v6446_v7 }
  0x8d   : > { %5481 = vmatprep.mubr.msk.f32.mxu0 %vm410_vm0, %v6451_v6 }
  0x8e   : > { %5294 = vmatmul.mubr.msk.f32.gmra.mrb[2].mxu1 %vm410_vm0, %v6012_v15  ;;  %v3748_v15 = vld [vmem:[%s6729_s3 + $0xb8] sm:$0xff] }
  0x8f   : > { %5296 = vmatprep.mubr.msk.f32.mxu1 %vm410_vm0, %v6018_v17  ;;  %v1847_v17 = vld [vmem:[%s6729_s3 + $0x50] sm:$0xff] }
  0x90   : > { %5482 = vmatmul.mubr.msk.f32.gmra.mrb[6].mxu0 %vm410_vm0, %v6460_v10 }
  0x91   : > { %5486 = vmatprep.mubr.msk.f32.mxu0 %vm410_vm0, %v6288_v3  ;;  %v1839_v3 = vld [vmem:[%s5976_s11 + $0x1] sm:$0xff] }
  0x92   : > { %5297 = vmatmul.mubr.msk.f32.gmra.mrb[4].mxu1 %vm410_vm0, %v6032_v19  ;;  %v6501_v19 = vld [vmem:[%s6271_s30 + $0x80] sm:$0xff] }
  0x93   : > { %5299 = vmatprep.mubr.msk.f32.mxu1 %vm410_vm0, %v6293_v4  ;;  %v4041_v4 = vld [vmem:[%s6729_s3 + $0xc8] sm:$0xff] }
  0x94   : > { %5487 = vmatmul.mubr.msk.f32.vlgmr.msra.gmra.mrb[0].mxu0 %vm410_vm0, %v6296_v5 }
  0x95   : > { %5499 = vmatpush3.msra.mxu0 %v3602_v35  ;;  %5489 = vmatprep.mubr.msk.f32.mxu0 %vm410_vm0, %v6306_v13 }
  0x96   : > { %5300 = vmatmul.mubr.msk.f32.gmra.mrb[6].mxu1 %vm410_vm0, %v4679_v12  ;;  %5512 = vmatprep.subr.mxu0 %v3748_v15 }
  0x97   : > { %5304 = vmatprep.mubr.msk.f32.mxu1 %vm410_vm0, %v6141_v44  ;;  %v4695_v44 = vld [vmem:[%s5957_s28 + $0x92] sm:$0xff]  ;;  %s4582_s28 = sshll.u32 %s6744_s22, 3 }
  0x98   : > { %5490 = vmatmul.mubr.msk.f32.gmra.mrb[2].mxu0 %vm410_vm0, %v6313_v21 }
  0x99   : > { %5492 = vmatprep.mubr.msk.f32.mxu0 %vm410_vm0, %v6325_v24 }
  0x9a   : > { %5305 = vmatmul.mubr.msk.f32.vlgmr.msra.gmra.mrb[0].mxu1 %vm410_vm0, %v6158_v47  ;;  %v1693_v47 = vld [vmem:[%s5976_s11] sm:$0xff] }
  0x9b   : > { %5317 = vmatpush3.msra.mxu1 %v1701_v2  ;;  %5307 = vmatprep.mubr.msk.f32.mxu1 %vm410_vm0, %v6164_v49  ;;  %v3895_v49 = vld [vmem:[%s6729_s3 + $0xc0] sm:$0xff] }
  0x9c   : > { %5330 = vmatprep.subr.mxu1 %v1847_v17  ;;  %5493 = vmatmul.mubr.msk.f32.gmra.mrb[4].mxu0 %vm410_vm0, %v6330_v27 }
  0x9d   : > { %5495 = vmatprep.mubr.msk.f32.mxu0 %vm410_vm0, %v6339_v32 }
  0x9e   : > { %5308 = vmatmul.mubr.msk.f32.gmra.mrb[2].mxu1 %vm410_vm0, %v6176_v51  ;;  %v6525_v51 = vld [vmem:[%s5976_s11 + $0x10] sm:$0xff] }
  0x9f   : > { %5310 = vmatprep.mubr.msk.f32.mxu1 %vm410_vm0, %v6179_v52  ;;  %v1993_v52 = vld [vmem:[%s6729_s3 + $0x58] sm:$0xff] }
  0xa0   : > { %5496 = vmatmul.mubr.msk.f32.gmra.mrb[6].mxu0 %vm410_vm0, %v6501_v19 }
  0xa1   : > { %5500 = vmatprep.mubr.msk.f32.mxu0 %vm410_vm0, %v6350_v40 }
  0xa2   : > { %5311 = vmatmul.mubr.msk.f32.gmra.mrb[4].mxu1 %vm410_vm0, %v6189_v53  ;;  %v6545_v53 = vld [vmem:[%s6271_s30 + $0x81] sm:$0xff] }
  0xa3   : > { %5313 = vmatprep.mubr.msk.f32.mxu1 %vm410_vm0, %v6355_v42 }
  0xa4   : > { %5501 = vmatmul.mubr.msk.f32.vlgmr.msra.gmra.mrb[0].mxu0 %vm410_vm0, %v6358_v45 }
  0xa5   : > { %5513 = vmatpush3.msra.mxu0 %v3748_v15  ;;  %5503 = vmatprep.mubr.msk.f32.mxu0 %vm410_vm0, %v6368_v54 }
  0xa6   : > { %5314 = vmatmul.mubr.msk.f32.gmra.mrb[6].mxu1 %vm410_vm0, %v4695_v44  ;;  %5526 = vmatprep.subr.mxu0 %v3895_v49 }
  0xa7   : > { %5318 = vmatprep.mubr.msk.f32.mxu1 %vm410_vm0, %v1693_v47 }
  0xa8   : > { %5504 = vmatmul.mubr.msk.f32.gmra.mrb[2].mxu0 %vm410_vm0, %v6375_v57 }
  0xa9   : > { %5506 = vmatprep.mubr.msk.f32.mxu0 %vm410_vm0, %v6387_v62 }
  0xaa   : > { %5319 = vmatmul.mubr.msk.f32.vlgmr.msra.gmra.mrb[0].mxu1 %vm410_vm0, %v6525_v51 }
  0xab   : > { %5331 = vmatpush3.msra.mxu1 %v1847_v17  ;;  %5321 = vmatprep.mubr.msk.f32.mxu1 %vm410_vm0, %v6098_v34 }
  0xac   : > { %5344 = vmatprep.subr.mxu1 %v1993_v52  ;;  %5507 = vmatmul.mubr.msk.f32.gmra.mrb[4].mxu0 %vm410_vm0, %v6392_v26 }
  0xad   : > { %5509 = vmatprep.mubr.msk.f32.mxu0 %vm410_vm0, %v6401_v29 }
  0xae   : > { %5322 = vmatmul.mubr.msk.f32.gmra.mrb[2].mxu1 %vm410_vm0, %v6110_v36 }
  0xaf   : > { %5324 = vmatprep.mubr.msk.f32.mxu1 %vm410_vm0, %v6118_v38 }
  0xb0   : > { %5510 = vmatmul.mubr.msk.f32.gmra.mrb[6].mxu0 %vm410_vm0, %v6545_v53 }
  0xb1   : > { %5514 = vmatprep.mubr.msk.f32.mxu0 %vm410_vm0, %v6412_v33 }
  0xb2   : > { %5325 = vmatmul.mubr.msk.f32.gmra.mrb[4].mxu1 %vm410_vm0, %v6129_v41 }
  0xb3   : > { %5327 = vmatprep.mubr.msk.f32.mxu1 %vm410_vm0, %v6138_v43 }
  0xb4   : > { %5515 = vmatmul.mubr.msk.f32.vlgmr.msra.gmra.mrb[0].mxu0 %vm410_vm0, %v6418_v0 }
  0xb5   : > { %5527 = vmatpush3.msra.mxu0 %v3895_v49  ;;  %5517 = vmatprep.mubr.msk.f32.mxu0 %vm410_vm0, %v6427_v37 }
  0xb6   : > { %5328 = vmatmul.mubr.msk.f32.gmra.mrb[6].mxu1 %vm410_vm0, %v6153_v46  ;;  %5540 = vmatprep.subr.mxu0 %v4041_v4 }
  0xb7   : > { %5332 = vmatprep.mubr.msk.f32.mxu1 %vm410_vm0, %v1839_v3 }
  0xb8   : > { %5518 = vmatmul.mubr.msk.f32.gmra.mrb[2].mxu0 %vm410_vm0, %v6434_v61 }
  0xb9   : > { %5520 = vmatprep.mubr.msk.f32.mxu0 %vm410_vm0, %v6446_v7 }
  0xba   : > { %5333 = vmatmul.mubr.msk.f32.vlgmr.msra.gmra.mrb[0].mxu1 %vm410_vm0, %v5979_v8  ;;  %v1985_v8 = vld [vmem:[%s5976_s11 + $0x2] sm:$0xff]  ;;  %s4579_s11 = sshll.u32 %s5844_s21, 3  ;;  %s6752_s21 = smov (!%p386_p10, %s5844_s21), 7 }
  0xbb   : > { %5345 = vmatpush3.msra.mxu1 %v1993_v52  ;;  %5335 = vmatprep.mubr.msk.f32.mxu1 %vm410_vm0, %v5982_v9  ;;  %v4187_v9 = vld [vmem:[%s6729_s3 + $0xd0] sm:$0xff]  ;;  %p377_p9 = scmp.lt.s32.totalorder %s4579_s11, 63  ;;  %s389_s12 = sadd.s32 %s4582_s28, %s6752_s21 }
  0xbc   : > { %5358 = vmatprep.subr.mxu1 %v2140_v22  ;;  %5521 = vmatmul.mubr.msk.f32.gmra.mrb[4].mxu0 %vm410_vm0, %v6451_v6  ;;  %s4583_s13 = sshll.u32 %s389_s12, 3 }
  0xbd   : > { %5523 = vmatprep.mubr.msk.f32.mxu0 %vm410_vm0, %v6460_v10  ;;  %s6750_s11 = smov (!%p377_p9, %s4579_s11), 63  ;;  %s391_s17 = scalar_lea.vmem %s6732_s6, %s4583_s13 }
  0xbe   : > { %5336 = vmatmul.mubr.msk.f32.gmra.mrb[2].mxu1 %vm410_vm0, %v5992_v11  ;;  %v4903_v11 = vld [vmem:[%s6271_s30 + $0x90] sm:$0xff]  ;;  %s380_s14 = sadd.s32 %s4580_s20, %s6750_s11 }
  0xbf   : > { %5338 = vmatprep.mubr.msk.f32.mxu1 %vm410_vm0, %v6005_v14  ;;  %v4919_v14 = vld [vmem:[%s6271_s30 + $0x91] sm:$0xff]  ;;  %s4581_s29 = sshll.u32 %s380_s14, 3 }
  0xc0   : > { %5524 = vmatmul.mubr.msk.f32.gmra.mrb[6].mxu0 %vm410_vm0, %v4887_v39  ;;  %s6695_s10 = scalar_lea.vmem %s6731_s5, %s4581_s29 }
  0xc1   : > { %5528 = vmatprep.mubr.msk.f32.mxu0 %vm410_vm0, %v6296_v5 }
  0xc2   : > { %5339 = vmatmul.mubr.msk.f32.gmra.mrb[4].mxu1 %vm410_vm0, %v6199_v55 }
  0xc3   : > { %5341 = vmatprep.mubr.msk.f32.mxu1 %vm410_vm0, %v6206_v56 }
  0xc4   : > { %5529 = vmatmul.mubr.msk.f32.vlgmr.msra.gmra.mrb[0].mxu0 %vm410_vm0, %v6306_v13 }
  0xc5   : > { %5541 = vmatpush3.msra.mxu0 %v4041_v4  ;;  %5531 = vmatprep.mubr.msk.f32.mxu0 %vm410_vm0, %v6313_v21 }
  0xc6   : > { %5342 = vmatmul.mubr.msk.f32.gmra.mrb[6].mxu1 %vm410_vm0, %v6219_v58  ;;  %5554 = vmatprep.subr.mxu0 %v4187_v9 }
  0xc7   : > { %5346 = vmatprep.mubr.msk.f32.mxu1 %vm410_vm0, %v1985_v8 }
  0xc8   : > { %5532 = vmatmul.mubr.msk.f32.gmra.mrb[2].mxu0 %vm410_vm0, %v6325_v24 }
  0xc9   : > { %5534 = vmatprep.mubr.msk.f32.mxu0 %vm410_vm0, %v6330_v27 }
  0xca   : > { %5347 = vmatmul.mubr.msk.f32.vlgmr.msra.gmra.mrb[0].mxu1 %vm410_vm0, %v6015_v16 }
  0xcb   : > { %5359 = vmatpush3.msra.mxu1 %v2140_v22  ;;  %5349 = vmatprep.mubr.msk.f32.mxu1 %vm410_vm0, %v6027_v18 }
  0xcc   : > { %5568 = vmatprep.subr.mxu1 %v5935_v1  ;;  %5535 = vmatmul.mubr.msk.f32.gmra.mrb[4].mxu0 %vm410_vm0, %v6339_v32 }
  0xcd   : > { %5537 = vmatprep.mubr.msk.f32.mxu0 %vm410_vm0, %v6501_v19 }
  0xce   : > { %5350 = vmatmul.mubr.msk.f32.gmra.mrb[2].mxu1 %vm410_vm0, %v6035_v20 }
  0xcf   : > { %5352 = vmatprep.mubr.msk.f32.mxu1 %vm410_vm0, %v6046_v23 }
  0xd0   : > { %5538 = vmatmul.mubr.msk.f32.gmra.mrb[6].mxu0 %vm410_vm0, %v4903_v11 }
  0xd1   : > { %5542 = vmatprep.mubr.msk.f32.mxu0 %vm410_vm0, %v6358_v45 }
  0xd2   : > { %5353 = vmatmul.mubr.msk.f32.gmra.mrb[4].mxu1 %vm410_vm0, %v6055_v25 }
  0xd3   : > { %5355 = vmatprep.mubr.msk.f32.mxu1 %vm410_vm0, %v6070_v28  ;;  %v4944_v28 = vld [vmem:[%s6730_s4] ss:$0 sm:$0xff] }
  0xd4   : > { %5543 = vmatmul.mubr.msk.f32.vlgmr.msra.gmra.mrb[0].mxu0 %vm410_vm0, %v6368_v54 }
  0xd5   : > { %5555 = vmatpush3.msra.mxu0 %v4187_v9  ;;  %5545 = vmatprep.mubr.msk.f32.mxu0 %vm410_vm0, %v6375_v57 }
  0xd6   : > { %5356 = vmatmul.mubr.msk.f32.gmra.mrb[6].mxu1 %vm410_vm0, %v6078_v30 }
  0xd7   : > { %5360 = vmatprep.mubr.msk.f32.mxu1 %vm410_vm0, %v6525_v51 }
  0xd8   : > { %5546 = vmatmul.mubr.msk.f32.gmra.mrb[2].mxu0 %vm410_vm0, %v6387_v62 }
  0xd9   : > { %5548 = vmatprep.mubr.msk.f32.mxu0 %vm410_vm0, %v6392_v26 }
  0xda   : > { %5361 = vmatmul.mubr.msk.f32.vlgmr.msra.gmra.mrb[0].mxu1 %vm410_vm0, %v6098_v34 }
  0xdb   : > { %5569 = vmatpush3.msra.mxu1 %v5935_v1  ;;  %5363 = vmatprep.mubr.msk.f32.mxu1 %vm410_vm0, %v6110_v36  ;;  %v4935_v1 = vld [vmem:[%s6271_s30 + $0x92] sm:$0xff] }
  0xdc   : > { %5549 = vmatmul.mubr.msk.f32.gmra.mrb[4].mxu0 %vm410_vm0, %v6401_v29 }
  0xdd   : > { %5551 = vmatprep.mubr.msk.f32.mxu0 %vm410_vm0, %v6545_v53 }
  0xde   : > { %5364 = vmatmul.mubr.msk.f32.gmra.mrb[2].mxu1 %vm410_vm0, %v6118_v38 }
  0xdf   : > { %5366 = vmatprep.mubr.msk.f32.mxu1 %vm410_vm0, %v6129_v41 }
  0xe0   : > { %5552 = vmatmul.mubr.msk.f32.gmra.mrb[6].mxu0 %vm410_vm0, %v4919_v14 }
  0xe1   : > { %5556 = vmatprep.mubr.msk.f32.mxu0 %vm410_vm0, %v6418_v0 }
  0xe2   : > { %5367 = vmatmul.mubr.msk.f32.gmra.mrb[4].mxu1 %vm410_vm0, %v6138_v43 }
  0xe3   : > { %5369 = vmatprep.mubr.msk.f32.mxu1 %vm410_vm0, %v6153_v46 }
  0xe4   : > { %5557 = vmatmul.mubr.msk.f32.vlgmr.msra.gmra.mrb[0].mxu0 %vm410_vm0, %v6427_v37 }
  0xe5   : > { %5559 = vmatprep.mubr.msk.f32.mxu0 %vm410_vm0, %v6434_v61 }
  0xe6   : > { %5370 = vmatmul.mubr.msk.f32.gmra.mrb[6].mxu1 %vm410_vm0, %v6161_v48 }
  0xe7   : > { %5380 = vmatprep.mubr.msk.f32.mxu1 %vm410_vm0, %v6199_v55 }
  0xe8   : > { %5560 = vmatmul.mubr.msk.f32.gmra.mrb[2].mxu0 %vm410_vm0, %v6446_v7 }
  0xe9   : > { %5562 = vmatprep.mubr.msk.f32.mxu0 %vm410_vm0, %v6451_v6 }
  0xea   : > { %5381 = vmatmul.mubr.msk.f32.vlgmr.msra.gmra.mrb[4].mxu1 %vm410_vm0, %v6206_v56 }
  0xeb   : > { %5383 = vmatprep.mubr.msk.f32.mxu1 %vm410_vm0, %v6219_v58 }
  0xec   : > { %5563 = vmatmul.mubr.msk.f32.gmra.mrb[4].mxu0 %vm410_vm0, %v6460_v10 }
  0xed   : > { %5565 = vmatprep.mubr.msk.f32.mxu0 %vm410_vm0, %v4887_v39  ;;  %v4382_v39 = vlaneseq }
  0xee   : > { %5384 = vmatmul.mubr.msk.f32.gmra.mrb[6].mxu1 %vm410_vm0, %v6224_v59 }
  0xf0   : > { %5566 = vmatmul.mubr.msk.f32.gmra.mrb[6].mxu0 %vm410_vm0, %v4935_v1  ;;  %v4383_v1 = vshrl.u32 %v4382_v39, 7 }
  0xf2   : > { %vm4385_vm1 = vcmp.eq.s32.totalorder %v4383_v1, 1  ;;  %vm4384_vm2 = vcmp.eq.s32.totalorder %v4383_v1, 0 }
 0x1ad   : > { %v5362_v16 = vpop.f32.mrb[0].mxu1 }
 0x1ae   : > { %v2231_v18 = vpop.f32.mrb[1].mxu1 }
 0x1b1   : > { %v5365_v20 = vpop.f32.mrb[2].mxu1 }
 0x1b2   : > { %v2241_v23 = vpop.f32.mrb[3].mxu1 }
 0x1b7   : > { %v5558_v25 = vpop.f32.mrb[0].mxu0 }
 0x1b8   : > { %v5570_v30 = vadd.f32 %v5558_v25, %v5362_v16  ;;  %v4278_v34 = vpop.f32.mrb[1].mxu0 }
 0x1b9   : > { %v5571_v36 = vadd.f32 %v4278_v34, %v2231_v18 }
 0x1ba   : > { %v4333_v38 = vadd.f32 %v5570_v30, %v4944_v28 }
 0x1bb   : > { %v4332_v41 = vadd.f32 %v5571_v36, %v4944_v28  ;;  %v5561_v43 = vpop.f32.mrb[2].mxu0 }
 0x1bc   : > { %4341 = vst [vmem:[%s6695_s10 + $0x8] sm:$0xff] %v4333_v38  ;;  %v4362_v46 = vmul.f32 %v4333_v38, %v4333_v38  ;;  %v5572_v48 = vadd.f32 %v5561_v43, %v5365_v20  ;;  %v4288_v55 = vpop.f32.mrb[3].mxu0 }
 0x1bd   : > { %v5382_v56 = vpop.f32.mrb[4].mxu1  ;;  %4340 = vst [vmem:[%s6695_s10] sm:$0xff] %v4332_v41  ;;  %v4348_v58 = vadd.f32 %v4333_v38, %v4332_v41  ;;  %v4361_v59 = vmul.f32 %v4332_v41, %v4332_v41  ;;  %v5573_v5 = vadd.f32 %v4288_v55, %v2241_v23 }
 0x1be   : > { %v2397_v13 = vpop.f32.mrb[5].mxu1  ;;  %v4335_v21 = vadd.f32 %v5572_v48, %v4944_v28 }
 0x1bf   : > { %v4369_v24 = vadd.f32 %v4362_v46, %v4361_v59  ;;  %v4334_v27 = vadd.f32 %v5573_v5, %v4944_v28  ;;  %v5564_v32 = vpop.f32.mrb[4].mxu0 }
 0x1c0   : > { %4343 = vst [vmem:[%s6695_s10 + $0x18] sm:$0xff] %v4335_v21  ;;  %v5574_v40 = vadd.f32 %v5564_v32, %v5382_v56  ;;  %v4298_v42 = vpop.f32.mrb[5].mxu0  ;;  %v4364_v26 = vmul.f32 %v4335_v21, %v4335_v21 }
 0x1c1   : > { %v5385_v45 = vpop.f32.mrb[6].mxu1  ;;  %4342 = vst [vmem:[%s6695_s10 + $0x10] sm:$0xff] %v4334_v27  ;;  %v4349_v50 = vadd.f32 %v4348_v58, %v4334_v27  ;;  %v4363_v54 = vmul.f32 %v4334_v27, %v4334_v27  ;;  %v5575_v57 = vadd.f32 %v4298_v42, %v2397_v13 }
 0x1c2   : > { %v2407_v60 = vpop.f32.mrb[7].mxu1  ;;  %v4337_v62 = vadd.f32 %v5574_v40, %v4944_v28 }
 0x1c3   : > { %v4370_v29 = vadd.f32 %v4369_v24, %v4363_v54  ;;  %v4336_v31 = vadd.f32 %v5575_v57, %v4944_v28  ;;  %v4350_v33 = vadd.f32 %v4349_v50, %v4335_v21  ;;  %v5567_v63 = vpop.f32.mrb[6].mxu0 }
 0x1c4   : > { %4345 = vst [vmem:[%s6695_s10 + $0x28] sm:$0xff] %v4337_v62  ;;  %v5576_v0 = vadd.f32 %v5567_v63, %v5385_v45  ;;  %v4308_v35 = vpop.f32.mrb[7].mxu0  ;;  %v4366_v10 = vmul.f32 %v4337_v62, %v4337_v62 }
 0x1c5   : > { %4344 = vst [vmem:[%s6695_s10 + $0x20] sm:$0xff] %v4336_v31  ;;  %v4351_v37 = vadd.f32 %v4350_v33, %v4336_v31  ;;  %v4365_v61 = vmul.f32 %v4336_v31, %v4336_v31  ;;  %v4371_v2 = vadd.f32 %v4370_v29, %v4364_v26  ;;  %v5577_v7 = vadd.f32 %v4308_v35, %v2407_v60 }
 0x1c6   : > { %v4339_v6 = vadd.f32 %v5576_v0, %v4944_v28 }
 0x1c7   : > { %v4372_v12 = vadd.f32 %v4371_v2, %v4365_v61  ;;  %v4338_v15 = vadd.f32 %v5577_v7, %v4944_v28  ;;  %v4352_v17 = vadd.f32 %v4351_v37, %v4337_v62 }
 0x1c8   : > { %4347 = vst [vmem:[%s6695_s10 + $0x38] sm:$0xff] %v4339_v6  ;;  %v4368_v49 = vmul.f32 %v4339_v6, %v4339_v6 }
 0x1c9   : > { %4346 = vst [vmem:[%s6695_s10 + $0x30] sm:$0xff] %v4338_v15  ;;  %v4353_v19 = vadd.f32 %v4352_v17, %v4338_v15  ;;  %v4367_v44 = vmul.f32 %v4338_v15, %v4338_v15  ;;  %v4373_v47 = vadd.f32 %v4372_v12, %v4366_v10 }
 0x1cb   : > { %v4354_v51 = vadd.f32 %v4353_v19, %v4339_v6  ;;  %v4374_v52 = vadd.f32 %v4373_v47, %v4367_v44 }
 0x1cd   : > { %v4355_v53 = vrot.slane %v4354_v51, 4  ;;  %v4375_v3 = vadd.f32 %v4374_v52, %v4368_v49 }
 0x1cf   : > { %v4356_v4 = vadd.f32 %v4355_v53, %v4354_v51  ;;  %v4376_v22 = vrot.slane %v4375_v3, 4 }
 0x1d1   : > { %v4357_v8 = vrot.slane %v4356_v4, 2  ;;  %v4377_v9 = vadd.f32 %v4376_v22, %v4375_v3 }
 0x1d3   : > { %v4358_v11 = vadd.f32 %v4357_v8, %v4356_v4  ;;  %v4378_v14 = vrot.slane %v4377_v9, 2 }
 0x1d5   : > { %v4379_v16 = vadd.f32 %v4378_v14, %v4377_v9  ;;  %v4359_v18 = vrot.slane %v4358_v11, 1 }
 0x1d7   : > { %v4380_v20 = vrot.slane %v4379_v16, 1  ;;  %v4360_v25 = vadd.f32 %v4359_v18, %v4358_v11 }
 0x1d9   : > { %v4381_v23 = vadd.f32 %v4380_v20, %v4379_v16 }
 0x1db   : > { %v4386_v28 = vsel %vm4385_vm1, %v4381_v23, 0.0 }
 0x1dc   : > { %v4387_v30 = vsel %vm4384_vm2, %v4360_v25, %v4386_v28 }
 0x1dd   : > { %4388 = vst [vmem:[%s391_s17] sm:$0xff] %v4387_v30 }
 0x1de PF: > { %s17_s25 = sadd.s32 1, %s5860_s25   ;;  %s6733_s21 = smov %s5852_s23 }
 0x1df   : > { %p14_p11 = scmp.ge.s32.totalorder %s17_s25, 18   ;;  %s6734_s22 = smov %s5856_s24 }
 0x1e0   : > { %s6735_s23 = smov %s6738_s26  ;;  %s6736_s24 = smov %s6742_s27 }
 0x1e1   :  { %16 = sbr.rel (!%p14_p11) target bundleno = 3 (0x3), region = 94 }

</bundles_post_ra>
